<compile_context>
chip_gen: v5e
topology: v5e:2x2
jax: 0.10.0
libtpu: 0.0.40
codegen_flags: <defaults>
</compile_context>

<pallas_src>
import numpy as np
import jax
import jax.numpy as jnp
from jax.experimental import pallas as pl
from jax.experimental.pallas import tpu as pltpu


def _blur_mm_kernel(m_ref, x_ref, o_ref):
    """out = M @ X (complex, Karatsuba 3-matmul split, bf16 MXU, f32 acc)."""
    mr = m_ref[0]          # (RB, P) bf16
    mi = m_ref[1]          # (RB, P) bf16
    xr = x_ref[0]          # (P, CB) bf16
    xi = x_ref[1]          # (P, CB) bf16
    ms = mr + mi           # VPU add (huge slot slack next to 3 MXU matmuls)
    xs = xr + xi

    t1 = jnp.dot(mr, xr, preferred_element_type=jnp.float32)   # Mr @ Xr
    t2 = jnp.dot(mi, xi, preferred_element_type=jnp.float32)   # Mi @ Xi
    t3 = jnp.dot(ms, xs, preferred_element_type=jnp.float32)   # (Mr+Mi) @ (Xr+Xi)

    o_ref[0] = t1 - t2              # real part
    o_ref[1] = t3 - t1 - t2         # imag part


def _is_two_tensorcore_chip():
    """Heuristic: v7x has 2 TensorCores per chip; v5e/v6e have 1."""
    try:
        kind = jax.devices()[0].device_kind.lower()
    except Exception:  # pragma: no cover - no device info
        return False
    return "v7" in kind


class BlurringKernelPallas:
    """JAX/Pallas port of torchBlurringKernel (torchPupil subclass)."""

    def __init__(self, aperture_size=1.0, computation_size=4.0, N_pts=64):
        self.aperture_size = aperture_size
        self.computation_size = computation_size
        self.N_pts = N_pts
        self.step_f = computation_size / N_pts
        self._op_cache = {}            # nd -> device-resident bf16 (2, P, P) operator

    # ------------------------------------------------------------------ pupil
    def get_pupil_array(self):
        # get_pupil_array is abstract in the torch base class; use a deterministic
        # synthetic pupil: the aperture disk sampled over the full computation window,
        # as real blurring-kernel subclasses do.
        # TODO(synk): the dim_bk == 3 branch (sum over pupil axis 2) is not exercised
        # since this synthetic pupil is 2-D.
        umax = self.computation_size / 2.0
        u = np.arange(-umax, umax, self.step_f, dtype=np.float64)[: self.N_pts]
        ux, uy = np.meshgrid(u, u, indexing="xy")
        uy = -uy
        ur2 = ux ** 2 + uy ** 2
        return (ur2 <= self.aperture_size ** 2).astype(np.complex128)

    # --------------------------------------------------------------- operator
    def _operator_bf16(self, n_data):
        """Fold pad+ifft2+fftshift+mask+ifftshift+fft2+crop into a device bf16 (2,P,P)."""
        if n_data in self._op_cache:
            return self._op_cache[n_data]
        assert n_data <= self.N_pts, (
            "n_data > N_pts not supported: torch fft with s=(N,N) would crop the input")
        n = self.N_pts
        j = np.arange(n)
        wf = np.exp(-2j * np.pi * np.outer(j, j) / n)        # fft2 factor
        wi = np.exp(+2j * np.pi * np.outer(j, j) / n) / n    # ifft2 factor
        s_fwd = np.roll(np.eye(n), n // 2, axis=0)           # fftshift permutation
        s_inv = np.roll(np.eye(n), -(n // 2), axis=0)        # ifftshift permutation
        a = (s_fwd @ wi)[:, :n_data]                         # (N, Nd): pad + ifft2 + fftshift
        b = (wf @ s_inv)[:n_data, :]                         # (Nd, N): ifftshift + fft2 + crop
        bk = self.get_pupil_array()                          # (N, N) complex pupil mask

        # M[(p1,p2),(q1,q2)] = sum_{k1,k2} b[p1,k1] b[p2,k2] bk[k1,k2] a[k1,q1] a[k2,q2]
        g = np.einsum("pk,kq->kpq", b, a)                    # (N, Nd, Nd)
        h = np.einsum("ab,brs->ars", bk, g)                  # (N, Nd, Nd)
        m4 = np.einsum("apq,ars->prqs", g, h)                # (Nd, Nd, Nd, Nd)
        m = m4.reshape(n_data * n_data, n_data * n_data)     # (P, P) complex

        mr = np.real(m).astype(np.float32)
        mi = np.imag(m).astype(np.float32)
        m2 = jax.device_put(
            jnp.asarray(np.stack([mr, mi]), dtype=jnp.bfloat16))   # (2, P, P) on device
        m2 = jax.block_until_ready(m2)
        self._op_cache[n_data] = m2
        return m2

    # -------------------------------------------------------------- tile plan
    @staticmethod
    def _tile_plan(p, cp, two_tc):
        """Pick (rb, cb, vmem_limit_bytes)."""
        rb, cb = p, cp
        if two_tc:
            # Exactly 2 parallel grid steps so both TensorCores are used.
            if cp % 256 == 0:
                cb = cp // 2                      # keep LHS M-dim full (rb = p)
            elif p % 256 == 0:
                rb = p // 2                       # fall back to a row split

        def ws_bytes(rb_, cb_):
            m = 2 * rb_ * p * 2                   # bf16 M block
            x = 2 * p * cb_ * 2                   # bf16 X block (resident)
            o = 2 * rb_ * cb_ * 4                 # f32 out block
            return 2 * (m + x + o)                # double-buffered

        # Conservative budget that fits every chip's scoped VMEM (v7x: 32 MiB default).
        budget = (24 << 20) if two_tc else (56 << 20)
        while (ws_bytes(rb, cb) > budget and rb > 128
               and rb % 2 == 0 and (rb // 2) % 8 == 0 and p % (rb // 2) == 0):
            rb //= 2

        vmem_cap = (48 << 20) if two_tc else (100 << 20)
        vmem_limit = int(min(max(ws_bytes(rb, cb) + (2 << 20), 16 << 20), vmem_cap))
        return rb, cb, vmem_limit

    # ----------------------------------------------------------------- forward
    def __call__(self, x):
        # x: complex array, shape (Nd, Nd, *extra); FFT dims are (0, 1).
        x = jnp.asarray(x)
        nd = int(x.shape[0])
        extra = tuple(x.shape[2:])
        c = int(np.prod(extra)) if extra else 1
        p = nd * nd

        # Operator planes (bf16 for the MXU; f32 accumulation inside the kernel).
        m2 = self._operator_bf16(nd)                                  # (2, P, P) bf16, cached on device

        # Lane-dense channel dim: pad C to a multiple of 128.
        # TODO(synk): for tiny channel counts (C=4 -> CP=128) most MXU columns are
        # zero padding; batching multiple inputs into the channel axis would fix that.
        cp = max(128, -(-c // 128) * 128)
        two_tc = _is_two_tensorcore_chip()
        rb, cb, vmem_limit = self._tile_plan(p, cp, two_tc)

        xf = x.reshape(p, c)                                          # columns = vec_r(x[..., ch])
        x2 = jnp.stack([jnp.real(xf), jnp.imag(xf)]).astype(jnp.bfloat16)  # (2, P, C)
        if cp != c:
            x2 = jnp.pad(x2, ((0, 0), (0, 0), (0, cp - c)))

        # Grid: channel blocks OUTER, row blocks INNER -> X block index is constant
        # across the inner loop (loaded once, stays resident); M streams per row block.
        out = pl.pallas_call(
            _blur_mm_kernel,
            out_shape=jax.ShapeDtypeStruct((2, p, cp), jnp.float32),
            grid_spec=pltpu.PrefetchScalarGridSpec(
                num_scalar_prefetch=0,
                grid=(cp // cb, p // rb),
                in_specs=[
                    pl.BlockSpec((2, rb, p), lambda ch, r: (0, r, 0)),   # M planes (row block)
                    pl.BlockSpec((2, p, cb), lambda ch, r: (0, 0, ch)),  # X planes (resident per ch)
                ],
                out_specs=pl.BlockSpec((2, rb, cb), lambda ch, r: (0, r, ch)),
            ),
            compiler_params=pltpu.CompilerParams(
                dimension_semantics=("parallel", "parallel"),
                vmem_limit_bytes=vmem_limit),
        )(m2, x2)

        out_c = (out[0] + 1j * out[1])[:, :c]                 # (P, C) complex64
        return out_c.reshape((nd, nd) + extra)


if __name__ == "__main__":
    key = jax.random.PRNGKey(0)
    k_re, k_im = jax.random.split(key)
    n_data, extra = 16, (2, 2)
    shape = (n_data, n_data) + extra
    x = (jax.random.normal(k_re, shape, dtype=jnp.float32)
         + 1j * jax.random.normal(k_im, shape, dtype=jnp.float32)).astype(jnp.complex64)

    module = BlurringKernelPallas(aperture_size=1.0, computation_size=4.0, N_pts=64)
    out = jax.block_until_ready(module(x))
    # Second call exercises the device-resident operator cache (no re-upload of M).
    out = jax.block_until_ready(module(x))

    # Reference (mirrors the torch forward exactly, using jnp.fft).
    n = module.N_pts
    bk = jnp.asarray(module.get_pupil_array()).astype(jnp.complex64).reshape(n, n, 1, 1)
    otf = jnp.fft.fftshift(jnp.fft.ifft2(x, s=(n, n), axes=(0, 1)), axes=(0, 1))
    ref = jnp.fft.fft2(jnp.fft.ifftshift(otf * bk, axes=(0, 1)), axes=(0, 1))[:n_data, :n_data]

    err = float(jnp.max(jnp.abs(out - ref)) / (jnp.max(jnp.abs(ref)) + 1e-8))
    assert err < 5e-2, f"mismatch: relative error {err}"
    print("KERNEL_OK")
</pallas_src>

<mosaic_0001>
module attributes {stable_mosaic.version = 11 : i64} {
  func.func @_blur_mm_kernel(%arg0: i32, %arg1: i32, %arg2: memref<2x256x256xbf16, #tpu.memory_space<vmem>>, %arg3: memref<2x256x128xbf16, #tpu.memory_space<vmem>>, %arg4: memref<2x256x128xf32, #tpu.memory_space<vmem>>) attributes {dimension_semantics = [#tpu.dimension_semantics<parallel>, #tpu.dimension_semantics<parallel>], iteration_bounds = array<i64: 1, 1>, scalar_prefetch = 0 : i64, scratch_operands = 0 : i64, tpu.core_type = #tpu.core_type<tc>, window_params = [{transform_indices = @transform_0, window_bounds = array<i64: 2, 256, 256>}, {transform_indices = @transform_1, window_bounds = array<i64: 2, 256, 128>}, {transform_indices = @transform_2, window_bounds = array<i64: 2, 256, 128>}]} {
    %c0 = arith.constant 0 : index
    %c0_0 = arith.constant 0 : index
    %c0_1 = arith.constant 0 : index
    %0 = vector.load %arg2[%c0, %c0_0, %c0_1] : memref<2x256x256xbf16, #tpu.memory_space<vmem>>, vector<1x256x256xbf16>
    %1 = vector.shape_cast %0 : vector<1x256x256xbf16> to vector<256x256xbf16>
    %c1 = arith.constant 1 : index
    %c0_2 = arith.constant 0 : index
    %c0_3 = arith.constant 0 : index
    %2 = vector.load %arg2[%c1, %c0_2, %c0_3] : memref<2x256x256xbf16, #tpu.memory_space<vmem>>, vector<1x256x256xbf16>
    %3 = vector.shape_cast %2 : vector<1x256x256xbf16> to vector<256x256xbf16>
    %c0_4 = arith.constant 0 : index
    %c0_5 = arith.constant 0 : index
    %c0_6 = arith.constant 0 : index
    %4 = vector.load %arg3[%c0_4, %c0_5, %c0_6] : memref<2x256x128xbf16, #tpu.memory_space<vmem>>, vector<1x256x128xbf16>
    %5 = vector.shape_cast %4 : vector<1x256x128xbf16> to vector<256x128xbf16>
    %c1_7 = arith.constant 1 : index
    %c0_8 = arith.constant 0 : index
    %c0_9 = arith.constant 0 : index
    %6 = vector.load %arg3[%c1_7, %c0_8, %c0_9] : memref<2x256x128xbf16, #tpu.memory_space<vmem>>, vector<1x256x128xbf16>
    %7 = vector.shape_cast %6 : vector<1x256x128xbf16> to vector<256x128xbf16>
    %8 = arith.addf %1, %3 : vector<256x256xbf16>
    %9 = arith.addf %5, %7 : vector<256x128xbf16>
    %cst = arith.constant dense<0.000000e+00> : vector<256x128xf32>
    %10 = tpu.matmul %1, %5, %cst {dimension_numbers = #tpu.dot_dimension_numbers<[1], [0], [0], [1], [0, 0, 1, 1], [], []>} : vector<256x256xbf16>, vector<256x128xbf16>, vector<256x128xf32> -> vector<256x128xf32>
    %cst_10 = arith.constant dense<0.000000e+00> : vector<256x128xf32>
    %11 = tpu.matmul %3, %7, %cst_10 {dimension_numbers = #tpu.dot_dimension_numbers<[1], [0], [0], [1], [0, 0, 1, 1], [], []>} : vector<256x256xbf16>, vector<256x128xbf16>, vector<256x128xf32> -> vector<256x128xf32>
    %cst_11 = arith.constant dense<0.000000e+00> : vector<256x128xf32>
    %12 = tpu.matmul %8, %9, %cst_11 {dimension_numbers = #tpu.dot_dimension_numbers<[1], [0], [0], [1], [0, 0, 1, 1], [], []>} : vector<256x256xbf16>, vector<256x128xbf16>, vector<256x128xf32> -> vector<256x128xf32>
    %13 = arith.subf %10, %11 : vector<256x128xf32>
    %c0_12 = arith.constant 0 : index
    %c0_13 = arith.constant 0 : index
    %c0_14 = arith.constant 0 : index
    %14 = vector.load %arg4[%c0_12, %c0_13, %c0_14] : memref<2x256x128xf32, #tpu.memory_space<vmem>>, vector<1x256x128xf32>
    %15 = vector.shape_cast %14 : vector<1x256x128xf32> to vector<256x128xf32>
    %16 = vector.shape_cast %13 : vector<256x128xf32> to vector<1x256x128xf32>
    tpu.vector_store %arg4[%c0_12, %c0_13, %c0_14], %16 {strides = array<i32>} : memref<2x256x128xf32, #tpu.memory_space<vmem>>, vector<1x256x128xf32>,
    %17 = arith.subf %12, %10 : vector<256x128xf32>
    %18 = arith.subf %17, %11 : vector<256x128xf32>
    %c1_15 = arith.constant 1 : index
    %c0_16 = arith.constant 0 : index
    %c0_17 = arith.constant 0 : index
    %19 = vector.load %arg4[%c1_15, %c0_16, %c0_17] : memref<2x256x128xf32, #tpu.memory_space<vmem>>, vector<1x256x128xf32>
    %20 = vector.shape_cast %19 : vector<1x256x128xf32> to vector<256x128xf32>
    %21 = vector.shape_cast %18 : vector<256x128xf32> to vector<1x256x128xf32>
    tpu.vector_store %arg4[%c1_15, %c0_16, %c0_17], %21 {strides = array<i32>} : memref<2x256x128xf32, #tpu.memory_space<vmem>>, vector<1x256x128xf32>,
    return
  }
  func.func @transform_0(%arg0: i32, %arg1: i32) -> (i32, i32, i32) {
    %c0_i32 = arith.constant 0 : i32
    %c0_i32_0 = arith.constant 0 : i32
    %c0_i32_1 = arith.constant 0 : i32
    return %c0_i32, %arg1, %c0_i32_0 : i32, i32, i32
  }
  func.func @transform_1(%arg0: i32, %arg1: i32) -> (i32, i32, i32) {
    %c0_i32 = arith.constant 0 : i32
    %c0_i32_0 = arith.constant 0 : i32
    %c0_i32_1 = arith.constant 0 : i32
    return %c0_i32, %c0_i32_0, %arg0 : i32, i32, i32
  }
  func.func @transform_2(%arg0: i32, %arg1: i32) -> (i32, i32, i32) {
    %c0_i32 = arith.constant 0 : i32
    %c0_i32_0 = arith.constant 0 : i32
    return %c0_i32, %arg1, %arg0 : i32, i32, i32
  }
}

</mosaic_0001>

<bundles_post_ra>
// kernel: tpu_custom_call.1
= control target key start
LH: loop header
LB: loop body
LE: loop exit
PB: predicated region body
PF: predicated region fallthrough
CT: control target
= control target key end

     0   :  { %7 = vsyncpa [#allocation3], 0  ;;  %s2483_s0 = inlined_call_operand.hbm [shape: bf16[2,256,256], index: 0, kind: input, shape index: {}]   ;;  %s2484_s1 = inlined_call_operand.hbm [shape: bf16[2,256,128], index: 1, kind: input, shape index: {}]   ;;  %s2485_s2 = inlined_call_operand.hbm [shape: f32[2,256,128], index: 2, kind: output, shape index: {}]  }
   0x1   :  { %8 = vsyncpa [#allocation6], 0 }
   0x2   :  { %9 = vsyncpa [#allocation4], 0  ;;  %s14_s11 = sshll.u32 %s2483_s0, 4  ;;  %s2318_s12 = smov [#allocation2]   ;;  %s15_s11 = int_to_ptr.hbm [resolvable:$true] %s14_s11 }
   0x3   :  { %s16_s13 = sshll.u32 %s2318_s12, 4  ;;  %s27_s16 = sshll.u32 %s2484_s1, 4  ;;  %s17_s13 = int_to_ptr.vmem [resolvable:$true] %s16_s13  ;;  %s28_s16 = int_to_ptr.hbm [resolvable:$true] %s27_s16 }
   0x4   :  { %s2319_s17 = smov 128   ;;  %s2320_s18 = smov 8  }
   0x5   :  { %22 = dma.hbm_to_vmem [thread:$0]  %s15_s11, 8192, %s17_s13, [#allocation3], %s2319_s17, %s2319_s17, %s2320_s18  }
   0x6   :  { %s2321_s19 = smov [#allocation5]   ;;  %s2322_s21 = smov 64  }
   0x7   :  { %s29_s20 = sshll.u32 %s2321_s19, 4  ;;  %s2323_s0 = smov 4   ;;  %s30_s20 = int_to_ptr.vmem [resolvable:$true] %s29_s20 }
   0x8   :  { %35 = dma.hbm_to_vmem [thread:$0]  %s28_s16, 4096, %s30_s20, [#allocation6], %s2322_s21, %s2322_s21, %s2323_s0  }
   0x9   :  { %2312 = dma.done.wait [#allocation3], 8192  }
   0xa   :  { %2313 = vsyncadd [#allocation3], 4294959104 }
   0xb   :  { %2314 = dma.done.wait [#allocation6], 4096  }
   0xc   :  { %2315 = vsyncadd [#allocation6], 4294963200  ;;  %v2192_v0 = vld [vmem:[#allocation5 + $0x38] sm:$0xff]  ;;  %v2191_v2 = vld [vmem:[#allocation5 + $0x30] sm:$0xff]  ;;  %s2324_s1 = smov [#allocation7]   ;;  %s1723_s25 = sshll.u32 %s2485_s2, 4  ;;  %s1724_s25 = int_to_ptr.hbm [resolvable:$true] %s1723_s25 }
   0xd   :  { %v2200_v1 = vld [vmem:[#allocation5 + $0x78] sm:$0xff]  ;;  %766 = vmatpush.bf16.msra.mxu0 %v2192_v0  ;;  %2217 = vmatpush.bf16.msra.mxu2 %v2192_v0  ;;  %v2199_v3 = vld [vmem:[#allocation5 + $0x70] sm:$0xff]  ;;  %v2190_v4 = vld [vmem:[#allocation5 + $0x28] sm:$0xff]  ;;  %s1721_s22 = sshll.u32 %s2324_s1, 4  ;;  %s1722_s22 = int_to_ptr.vmem [resolvable:$true] %s1721_s22 }
   0xe   :  { %855 = vmatpush.bf16.msra.mxu1 %v2200_v1  ;;  %2225 = vmatpush.bf16.msra.mxu3 %v2200_v1  ;;  %v2198_v5 = vld [vmem:[#allocation5 + $0x68] sm:$0xff]  ;;  %v2189_v6 = vld [vmem:[#allocation5 + $0x20] sm:$0xff]  ;;  %v2188_v8 = vld [vmem:[#allocation5 + $0x18] sm:$0xff] }
   0xf   :  { %v2197_v7 = vld [vmem:[#allocation5 + $0x60] sm:$0xff]  ;;  %v2196_v9 = vld [vmem:[#allocation5 + $0x58] sm:$0xff]  ;;  %v2187_v12 = vld [vmem:[#allocation5 + $0x10] sm:$0xff] }
  0x10   :  { %v123_v10 = vld [vmem:[#allocation5 + $0x38] sm:$0xff]   ;;  %v2195_v15 = vld [vmem:[#allocation5 + $0x50] sm:$0xff]  ;;  %v2186_v24 = vld [vmem:[#allocation5 + $0x8] sm:$0xff] }
  0x11   :  { %767 = vmatpush.bf16.msra.mxu0 %v2191_v2  ;;  %2218 = vmatpush.bf16.msra.mxu2 %v2191_v2  ;;  %v156_v11 = vld [vmem:[#allocation5 + $0xb8] sm:$0xff]   ;;  %v412_v16 = vunpack.c.l.bf16 %v123_v10  ;;  %v413_v17 = vunpack.c.h.bf16 %v123_v10  ;;  %v2194_v25 = vld [vmem:[#allocation5 + $0x48] sm:$0xff]  ;;  %v121_v26 = vld [vmem:[#allocation5 + $0x30] sm:$0xff]  }
  0x12   :  { %856 = vmatpush.bf16.msra.mxu1 %v2199_v3  ;;  %2226 = vmatpush.bf16.msra.mxu3 %v2199_v3  ;;  %v139_v13 = vld [vmem:[#allocation5 + $0x78] sm:$0xff]   ;;  %v444_v18 = vunpack.c.l.bf16 %v156_v11  ;;  %v445_v19 = vunpack.c.h.bf16 %v156_v11  ;;  %v154_v27 = vld [vmem:[#allocation5 + $0xb0] sm:$0xff]   ;;  %v2185_v28 = vld [vmem:[#allocation5] sm:$0xff]  ;;  %v410_v43 = vunpack.c.l.bf16 %v121_v26  ;;  %v411_v44 = vunpack.c.h.bf16 %v121_v26 }
  0x13   :  { %v172_v14 = vld [vmem:[#allocation5 + $0xf8] sm:$0xff]   ;;  %v428_v20 = vunpack.c.l.bf16 %v139_v13  ;;  %v429_v21 = vunpack.c.h.bf16 %v139_v13  ;;  %v1739_v29 = vld [vmem:[#allocation2] sm:$0xf]  ;;  %v2122_v30 = vld [vmem:[#allocation2 + $0x4] sm:$0xf0]  ;;  %v442_v45 = vunpack.c.l.bf16 %v154_v27  ;;  %v443_v46 = vunpack.c.h.bf16 %v154_v27 }
  0x14   :  { %v460_v22 = vunpack.c.l.bf16 %v172_v14  ;;  %v461_v23 = vunpack.c.h.bf16 %v172_v14  ;;  %v137_v31 = vld [vmem:[#allocation5 + $0x70] sm:$0xff]   ;;  %v1803_v33 = vld [vmem:[#allocation2 + $0x80] sm:$0xf]  ;;  %v2138_v34 = vld [vmem:[#allocation2 + $0x84] sm:$0xf0]  ;;  %v476_v36 = vadd.f32 %v444_v18, %v412_v16  ;;  %v477_v37 = vadd.f32 %v445_v19, %v413_v17 }
  0x15   :  { %768 = vmatpush.bf16.msra.mxu0 %v2190_v4  ;;  %2219 = vmatpush.bf16.msra.mxu2 %v2190_v4  ;;  %v170_v32 = vld [vmem:[#allocation5 + $0xf0] sm:$0xff]   ;;  %v2121_v35 = vld [vmem:[#allocation2 + $0x4] sm:$0xf]  ;;  %v1741_v40 = vld [vmem:[#allocation2 + $0x8] sm:$0xf0]  ;;  %v426_v48 = vunpack.c.l.bf16 %v137_v31  ;;  %v427_v49 = vunpack.c.h.bf16 %v137_v31  ;;  %v1740_v54 = vor.u32 %v2122_v30, %v1739_v29  ;;  %v1804_v55 = vor.u32 %v2138_v34, %v1803_v33 }
  0x16   :  { %857 = vmatpush.bf16.msra.mxu1 %v2198_v5  ;;  %2227 = vmatpush.bf16.msra.mxu3 %v2198_v5  ;;  %v492_v38 = vadd.f32 %v460_v22, %v428_v20  ;;  %v493_v39 = vadd.f32 %v461_v23, %v429_v21  ;;  %v2137_v41 = vld [vmem:[#allocation2 + $0x84] sm:$0xf]  ;;  %v1805_v42 = vld [vmem:[#allocation2 + $0x88] sm:$0xf0]  ;;  %v458_v50 = vunpack.c.l.bf16 %v170_v32  ;;  %v459_v51 = vunpack.c.h.bf16 %v170_v32  ;;  %v2208_v52 = vld [vmem:[#allocation5 + $0xb8] sm:$0xff] }
  0x17   :  { %v2193_v47 = vld [vmem:[#allocation5 + $0x40] sm:$0xff]  ;;  %v2216_v53 = vld [vmem:[#allocation5 + $0xf8] sm:$0xff]  ;;  %v1744_v56 = vor.u32 %v2121_v35, %v1741_v40  ;;  %v1808_v57 = vor.u32 %v2137_v41, %v1805_v42  ;;  %v501_v58 = vpack.c.bf16 %v477_v37, %v476_v36  ;;  %v474_v60 = vadd.f32 %v442_v45, %v410_v43  ;;  %v2207_v0 = vld [vmem:[#allocation5 + $0xb0] sm:$0xff] }
  0x18   :  { %v509_v59 = vpack.c.bf16 %v493_v39, %v492_v38  ;;  %v475_v61 = vadd.f32 %v443_v46, %v411_v44  ;;  %v490_v62 = vadd.f32 %v458_v50, %v426_v48  ;;  %v491_v63 = vadd.f32 %v459_v51, %v427_v49  ;;  %v2215_v1 = vld [vmem:[#allocation5 + $0xf0] sm:$0xff]  ;;  %v119_v2 = vld [vmem:[#allocation5 + $0x28] sm:$0xff]   ;;  %v2140_v27 = vld [vmem:[#allocation2 + $0x94] sm:$0xf0] }
  0x19   :  { %769 = vmatpush.bf16.msra.mxu0 %v2189_v6  ;;  %2220 = vmatpush.bf16.msra.mxu2 %v2189_v6  ;;  %v152_v5 = vld [vmem:[#allocation5 + $0xa8] sm:$0xff]   ;;  %v408_v6 = vunpack.c.l.bf16 %v119_v2  ;;  %v1747_v23 = vld [vmem:[#allocation2 + $0x10] sm:$0xf]  ;;  %v1749_v29 = vld [vmem:[#allocation2 + $0x18] sm:$0xf0] }
  0x1a   :  { %858 = vmatpush.bf16.msra.mxu1 %v2197_v7  ;;  %2228 = vmatpush.bf16.msra.mxu3 %v2197_v7  ;;  %v500_v3 = vpack.c.bf16 %v475_v61, %v474_v60  ;;  %v508_v4 = vpack.c.bf16 %v491_v63, %v490_v62  ;;  %v409_v7 = vunpack.c.h.bf16 %v119_v2  ;;  %v2206_v10 = vld [vmem:[#allocation5 + $0xa8] sm:$0xff]  ;;  %v441_v13 = vunpack.c.h.bf16 %v152_v5  ;;  %v1811_v26 = vld [vmem:[#allocation2 + $0x90] sm:$0xf]  ;;  %v2139_v30 = vld [vmem:[#allocation2 + $0x94] sm:$0xf] }
  0x1b   :  { %v2214_v11 = vld [vmem:[#allocation5 + $0xe8] sm:$0xff]  ;;  %v1813_v31 = vld [vmem:[#allocation2 + $0x98] sm:$0xf0]  ;;  %v1812_v33 = vor.u32 %v2140_v27, %v1811_v26  ;;  %v2205_v36 = vld [vmem:[#allocation5 + $0xa0] sm:$0xff] }
  0x1c   :  { %v473_v19 = vadd.f32 %v441_v13, %v409_v7  ;;  %v1816_v35 = vor.u32 %v2139_v30, %v1813_v31  ;;  %v2213_v37 = vld [vmem:[#allocation5 + $0xe0] sm:$0xff]  ;;  %v1757_v61 = vld [vmem:[#allocation2 + $0x28] sm:$0xf0]  ;;  %v148_v7 = vld [vmem:[#allocation5 + $0x98] sm:$0xff]  }
  0x1d   :  { %770 = vmatpush.bf16.msra.mxu0 %v2188_v8  ;;  %2221 = vmatpush.bf16.msra.mxu2 %v2188_v8  ;;  %v135_v8 = vld [vmem:[#allocation5 + $0x68] sm:$0xff]   ;;  %v117_v38 = vld [vmem:[#allocation5 + $0x20] sm:$0xff]   ;;  %v437_v13 = vunpack.c.h.bf16 %v148_v7  ;;  %v1827_v26 = vld [vmem:[#allocation2 + $0xb0] sm:$0xf] }
  0x1e   :  { %859 = vmatpush.bf16.msra.mxu1 %v2196_v9  ;;  %2229 = vmatpush.bf16.msra.mxu3 %v2196_v9  ;;  %v168_v9 = vld [vmem:[#allocation5 + $0xe8] sm:$0xff]   ;;  %v424_v14 = vunpack.c.l.bf16 %v135_v8  ;;  %v150_v39 = vld [vmem:[#allocation5 + $0xa0] sm:$0xff]   ;;  %v406_v40 = vunpack.c.l.bf16 %v117_v38  ;;  %v407_v41 = vunpack.c.h.bf16 %v117_v38  ;;  %v2144_v27 = vld [vmem:[#allocation2 + $0xb4] sm:$0xf0] }
  0x1f   :  { %v456_v16 = vunpack.c.l.bf16 %v168_v9  ;;  %v457_v17 = vunpack.c.h.bf16 %v168_v9  ;;  %v133_v42 = vld [vmem:[#allocation5 + $0x60] sm:$0xff]   ;;  %v438_v44 = vunpack.c.l.bf16 %v150_v39  ;;  %v439_v45 = vunpack.c.h.bf16 %v150_v39  ;;  %v1821_v63 = vld [vmem:[#allocation2 + $0xa8] sm:$0xf0]  ;;  %v2143_v30 = vld [vmem:[#allocation2 + $0xb4] sm:$0xf] }
  0x20   :  { %v166_v43 = vld [vmem:[#allocation5 + $0xe0] sm:$0xff]   ;;  %v422_v46 = vunpack.c.l.bf16 %v133_v42  ;;  %v1829_v31 = vld [vmem:[#allocation2 + $0xb8] sm:$0xf0]  ;;  %v113_v38 = vld [vmem:[#allocation5 + $0x10] sm:$0xff]  }
  0x21   :  { %771 = vmatpush.bf16.msra.mxu0 %v2187_v12  ;;  %2222 = vmatpush.bf16.msra.mxu2 %v2187_v12  ;;  %v440_v12 = vunpack.c.l.bf16 %v152_v5  ;;  %v488_v20 = vadd.f32 %v456_v16, %v424_v14  ;;  %v454_v48 = vunpack.c.l.bf16 %v166_v43  ;;  %v455_v49 = vunpack.c.h.bf16 %v166_v43  ;;  %v2125_v60 = vld [vmem:[#allocation2 + $0x24] sm:$0xf]  ;;  %v2212_v5 = vld [vmem:[#allocation5 + $0xd8] sm:$0xff]  ;;  %v146_v39 = vld [vmem:[#allocation5 + $0x90] sm:$0xff]  }
  0x22   :  { %860 = vmatpush.bf16.msra.mxu1 %v2195_v15  ;;  %2230 = vmatpush.bf16.msra.mxu3 %v2195_v15  ;;  %v425_v15 = vunpack.c.h.bf16 %v135_v8  ;;  %v470_v50 = vadd.f32 %v438_v44, %v406_v40  ;;  %v471_v51 = vadd.f32 %v439_v45, %v407_v41  ;;  %v2141_v62 = vld [vmem:[#allocation2 + $0xa4] sm:$0xf]  ;;  %v1760_v2 = vor.u32 %v2125_v60, %v1757_v61  ;;  %v162_v43 = vld [vmem:[#allocation5 + $0xd0] sm:$0xff]   ;;  %v1773_v61 = vld [vmem:[#allocation2 + $0x48] sm:$0xf0] }
  0x23   :  { %v472_v18 = vadd.f32 %v440_v12, %v408_v6  ;;  %v115_v6 = vld [vmem:[#allocation5 + $0x18] sm:$0xff]   ;;  %v436_v12 = vunpack.c.l.bf16 %v148_v7  ;;  %v402_v40 = vunpack.c.l.bf16 %v113_v38  ;;  %v403_v41 = vunpack.c.h.bf16 %v113_v38  ;;  %v2129_v60 = vld [vmem:[#allocation2 + $0x44] sm:$0xf]  ;;  %v144_v7 = vld [vmem:[#allocation5 + $0x88] sm:$0xff]  }
  0x24   :  { %v489_v21 = vadd.f32 %v457_v17, %v425_v15  ;;  %v404_v8 = vunpack.c.l.bf16 %v115_v6  ;;  %v405_v9 = vunpack.c.h.bf16 %v115_v6  ;;  %v434_v44 = vunpack.c.l.bf16 %v146_v39  ;;  %v111_v6 = vld [vmem:[#allocation5 + $0x8] sm:$0xff]   ;;  %v109_v38 = vld [vmem:[#allocation5] sm:$0xff]  }
  0x25   :  { %772 = vmatpush.bf16.msra.mxu0 %v2186_v24  ;;  %2223 = vmatpush.bf16.msra.mxu2 %v2186_v24  ;;  %v499_v22 = vpack.c.bf16 %v473_v19, %v472_v18  ;;  %v2124_v24 = vld [vmem:[#allocation2 + $0x14] sm:$0xf0]  ;;  %v435_v45 = vunpack.c.h.bf16 %v146_v39  ;;  %v142_v39 = vld [vmem:[#allocation5 + $0x80] sm:$0xff]  }
  0x26   :  { %861 = vmatpush.bf16.msra.mxu1 %v2194_v25  ;;  %2231 = vmatpush.bf16.msra.mxu3 %v2194_v25  ;;  %v507_v25 = vpack.c.bf16 %v489_v21, %v488_v20  ;;  %v1748_v32 = vor.u32 %v2124_v24, %v1747_v23  ;;  %v468_v18 = vadd.f32 %v436_v12, %v404_v8  ;;  %v1763_v23 = vld [vmem:[#allocation2 + $0x30] sm:$0xf]  ;;  %v2128_v24 = vld [vmem:[#allocation2 + $0x34] sm:$0xf0]  ;;  %v400_v8 = vunpack.c.l.bf16 %v111_v6 }
  0x27   :  { %v469_v19 = vadd.f32 %v437_v13, %v405_v9  ;;  %v401_v9 = vunpack.c.h.bf16 %v111_v6  ;;  %v432_v12 = vunpack.c.l.bf16 %v144_v7  ;;  %v433_v13 = vunpack.c.h.bf16 %v144_v7  ;;  %v1859_v6 = vld [vmem:[#allocation2 + $0xf0] sm:$0xf]  ;;  %v2152_v7 = vld [vmem:[#allocation2 + $0xf4] sm:$0xf0] }
  0x29   :  { %773 = vmatpush.bf16.msra.mxu0 %v2185_v28  ;;  %2224 = vmatpush.bf16.msra.mxu2 %v2185_v28  ;;  %v2123_v28 = vld [vmem:[#allocation2 + $0x14] sm:$0xf] }
  0x2a   :  { %862 = vmatpush.bf16.msra.mxu1 %v2193_v47  ;;  %2232 = vmatpush.bf16.msra.mxu3 %v2193_v47  ;;  %v1752_v34 = vor.u32 %v2123_v28, %v1749_v29  ;;  %v423_v47 = vunpack.c.h.bf16 %v133_v42  ;;  %v2127_v28 = vld [vmem:[#allocation2 + $0x34] sm:$0xf]  ;;  %v1765_v29 = vld [vmem:[#allocation2 + $0x38] sm:$0xf0] }
  0x2b   :  { %v129_v42 = vld [vmem:[#allocation5 + $0x50] sm:$0xff]  }
  0x2c   :  { %774 = vmatmul.bf16.vlgmr.msra.gmra.mxu0 %v1740_v54  ;;  %814 = vmatmul.bf16.vlgmr.msra.gmra.mxu2 %v1804_v55  ;;  %v498_v54 = vpack.c.bf16 %v471_v51, %v470_v50  ;;  %v1755_v55 = vld [vmem:[#allocation2 + $0x20] sm:$0xf]  ;;  %v466_v50 = vadd.f32 %v434_v44, %v402_v40  ;;  %v467_v51 = vadd.f32 %v435_v45, %v403_v41  ;;  %v398_v40 = vunpack.c.l.bf16 %v109_v38 }
  0x2d   :  { %1200 = vmatpush.bf16.msrb.mxu2 %v2208_v52  ;;  %863 = vmatmul.bf16.vlgmr.msra.gmra.mxu1 %v1744_v56  ;;  %v486_v52 = vadd.f32 %v454_v48, %v422_v46  ;;  %v2126_v56 = vld [vmem:[#allocation2 + $0x24] sm:$0xf0]  ;;  %v418_v46 = vunpack.c.l.bf16 %v129_v42  ;;  %v450_v48 = vunpack.c.l.bf16 %v162_v43  ;;  %v399_v41 = vunpack.c.h.bf16 %v109_v38 }
  0x2e   :  { %1289 = vmatpush.bf16.msrb.mxu3 %v2216_v53  ;;  %1378 = vmatpush.bf16.msrb.mxu0 %v501_v58  ;;  %v487_v53 = vadd.f32 %v455_v49, %v423_v47  ;;  %v1819_v58 = vld [vmem:[#allocation2 + $0xa0] sm:$0xf]  ;;  %v419_v47 = vunpack.c.h.bf16 %v129_v42  ;;  %v451_v49 = vunpack.c.h.bf16 %v162_v43  ;;  %v430_v44 = vunpack.c.l.bf16 %v142_v39 }
  0x2f   :  { %903 = vmatmul.bf16.vlgmr.msra.gmra.mxu3 %v1808_v57  ;;  %1467 = vmatpush.bf16.msrb.mxu1 %v509_v59  ;;  %v2142_v59 = vld [vmem:[#allocation2 + $0xa4] sm:$0xf0]  ;;  %v125_v42 = vld [vmem:[#allocation5 + $0x40] sm:$0xff]   ;;  %v431_v45 = vunpack.c.h.bf16 %v142_v39 }
  0x30   :  { %v506_v57 = vpack.c.bf16 %v487_v53, %v486_v52  ;;  %v482_v52 = vadd.f32 %v450_v48, %v418_v46  ;;  %v483_v53 = vadd.f32 %v451_v49, %v419_v47  ;;  %v158_v43 = vld [vmem:[#allocation5 + $0xc0] sm:$0xff]   ;;  %v414_v46 = vunpack.c.l.bf16 %v125_v42 }
  0x31   :  { %1201 = vmatpush.bf16.msrb.mxu2 %v2207_v0  ;;  %v1756_v0 = vor.u32 %v2126_v56, %v1755_v55  ;;  %v1771_v55 = vld [vmem:[#allocation2 + $0x40] sm:$0xf]  ;;  %v2130_v56 = vld [vmem:[#allocation2 + $0x44] sm:$0xf0]  ;;  %v415_v47 = vunpack.c.h.bf16 %v125_v42  ;;  %v446_v48 = vunpack.c.l.bf16 %v158_v43  ;;  %v447_v49 = vunpack.c.h.bf16 %v158_v43  ;;  %v46_v43 = vld [vmem:[#allocation2 + $0x10] sm:$0xff] }
  0x32   :  { %1290 = vmatpush.bf16.msrb.mxu3 %v2215_v1  ;;  %1379 = vmatpush.bf16.msrb.mxu0 %v500_v3  ;;  %v1820_v1 = vor.u32 %v2142_v59, %v1819_v58  ;;  %v1824_v3 = vor.u32 %v2141_v62, %v1821_v63  ;;  %v1835_v58 = vld [vmem:[#allocation2 + $0xc0] sm:$0xf]  ;;  %v2146_v59 = vld [vmem:[#allocation2 + $0xc4] sm:$0xf0]  ;;  %v2145_v62 = vld [vmem:[#allocation2 + $0xc4] sm:$0xf] }
  0x33   :  { %1468 = vmatpush.bf16.msrb.mxu1 %v508_v4  ;;  %v2204_v4 = vld [vmem:[#allocation5 + $0x98] sm:$0xff]  ;;  %v1837_v63 = vld [vmem:[#allocation2 + $0xc8] sm:$0xf0] }
  0x35   :  { %1202 = vmatpush.bf16.msrb.mxu2 %v2206_v10  ;;  %v131_v10 = vld [vmem:[#allocation5 + $0x58] sm:$0xff]  }
  0x36   :  { %1291 = vmatpush.bf16.msrb.mxu3 %v2214_v11  ;;  %1380 = vmatpush.bf16.msrb.mxu0 %v499_v22  ;;  %v164_v11 = vld [vmem:[#allocation5 + $0xd8] sm:$0xff]   ;;  %v420_v14 = vunpack.c.l.bf16 %v131_v10  ;;  %v421_v15 = vunpack.c.h.bf16 %v131_v10  ;;  %v497_v22 = vpack.c.bf16 %v469_v19, %v468_v18  ;;  %v127_v10 = vld [vmem:[#allocation5 + $0x48] sm:$0xff]   ;;  %v464_v18 = vadd.f32 %v432_v12, %v400_v8  ;;  %v2135_v8 = vld [vmem:[#allocation2 + $0x74] sm:$0xf] }
  0x37   :  { %1469 = vmatpush.bf16.msrb.mxu1 %v507_v25  ;;  %v452_v16 = vunpack.c.l.bf16 %v164_v11  ;;  %v453_v17 = vunpack.c.h.bf16 %v164_v11  ;;  %v160_v11 = vld [vmem:[#allocation5 + $0xc8] sm:$0xff]   ;;  %v465_v19 = vadd.f32 %v433_v13, %v401_v9  ;;  %v1797_v9 = vld [vmem:[#allocation2 + $0x78] sm:$0xf0]  ;;  %v1860_v13 = vor.u32 %v2152_v7, %v1859_v6 }
  0x39   :  { %1203 = vmatpush.bf16.msrb.mxu2 %v2205_v36  ;;  %v484_v20 = vadd.f32 %v452_v16, %v420_v14  ;;  %v485_v21 = vadd.f32 %v453_v17, %v421_v15  ;;  %v2203_v36 = vld [vmem:[#allocation5 + $0x90] sm:$0xff]  ;;  %v416_v14 = vunpack.c.l.bf16 %v127_v10  ;;  %v417_v15 = vunpack.c.h.bf16 %v127_v10 }
  0x3a   :  { %1292 = vmatpush.bf16.msrb.mxu3 %v2213_v37  ;;  %1381 = vmatpush.bf16.msrb.mxu0 %v498_v54  ;;  %v2211_v37 = vld [vmem:[#allocation5 + $0xd0] sm:$0xff]  ;;  %v496_v54 = vpack.c.bf16 %v467_v51, %v466_v50  ;;  %v448_v16 = vunpack.c.l.bf16 %v160_v11  ;;  %v449_v17 = vunpack.c.h.bf16 %v160_v11  ;;  %v462_v50 = vadd.f32 %v430_v44, %v398_v40  ;;  %v1861_v11 = vld [vmem:[#allocation2 + $0xf8] sm:$0xf0] }
  0x3b   :  { %1470 = vmatpush.bf16.msrb.mxu1 %v506_v57  ;;  %v505_v25 = vpack.c.bf16 %v485_v21, %v484_v20  ;;  %v504_v57 = vpack.c.bf16 %v483_v53, %v482_v52  ;;  %v463_v51 = vadd.f32 %v431_v45, %v399_v41  ;;  %v478_v52 = vadd.f32 %v446_v48, %v414_v46  ;;  %v2151_v10 = vld [vmem:[#allocation2 + $0xf4] sm:$0xf]  ;;  %v47_v44 = vld [vmem:[#allocation2 + $0x18] sm:$0xff] }
  0x3c   :  { %779 = vmatmul.bf16.gmra.mxu0 %v1748_v32  ;;  %819 = vmatmul.bf16.gmra.mxu2 %v1812_v33  ;;  %v1764_v32 = vor.u32 %v2128_v24, %v1763_v23  ;;  %v1828_v33 = vor.u32 %v2144_v27, %v1827_v26  ;;  %v480_v20 = vadd.f32 %v448_v16, %v416_v14  ;;  %v1779_v23 = vld [vmem:[#allocation2 + $0x50] sm:$0xf]  ;;  %v2132_v24 = vld [vmem:[#allocation2 + $0x54] sm:$0xf0]  ;;  %v44_v16 = vld [vmem:[#allocation2] sm:$0xff]  ;;  %v178_v48 = vunpack.c.l.bf16 %v46_v43 }
  0x3d   :  { %868 = vmatmul.bf16.gmra.mxu1 %v1752_v34  ;;  %1204 = vmatpush.bf16.msrb.mxu2 %v2204_v4  ;;  %v1768_v34 = vor.u32 %v2127_v28, %v1765_v29  ;;  %v2202_v4 = vld [vmem:[#allocation5 + $0x88] sm:$0xff]  ;;  %v481_v21 = vadd.f32 %v449_v17, %v417_v15  ;;  %v1843_v26 = vld [vmem:[#allocation2 + $0xd0] sm:$0xf]  ;;  %v2148_v27 = vld [vmem:[#allocation2 + $0xd4] sm:$0xf0]  ;;  %v479_v53 = vadd.f32 %v447_v49, %v415_v47 }
  0x3e   :  { %1293 = vmatpush.bf16.msrb.mxu3 %v2212_v5  ;;  %1382 = vmatpush.bf16.msrb.mxu0 %v497_v22  ;;  %v2210_v5 = vld [vmem:[#allocation5 + $0xc8] sm:$0xff]  ;;  %v495_v22 = vpack.c.bf16 %v465_v19, %v464_v18  ;;  %v2131_v28 = vld [vmem:[#allocation2 + $0x54] sm:$0xf]  ;;  %v1781_v29 = vld [vmem:[#allocation2 + $0x58] sm:$0xf0]  ;;  %v1800_v14 = vor.u32 %v2135_v8, %v1797_v9  ;;  %v1864_v15 = vor.u32 %v2151_v10, %v1861_v11 }
  0x3f   :  { %908 = vmatmul.bf16.gmra.mxu3 %v1816_v35  ;;  %1471 = vmatpush.bf16.msrb.mxu1 %v505_v25  ;;  %v1832_v35 = vor.u32 %v2143_v30, %v1829_v31  ;;  %v503_v25 = vpack.c.bf16 %v481_v21, %v480_v20  ;;  %v2147_v30 = vld [vmem:[#allocation2 + $0xd4] sm:$0xf]  ;;  %v1845_v31 = vld [vmem:[#allocation2 + $0xd8] sm:$0xf0]  ;;  %v45_v17 = vld [vmem:[#allocation2 + $0x8] sm:$0xff]  ;;  %v174_v20 = vunpack.c.l.bf16 %v44_v16 }
  0x40   :  { %v77_v18 = vld [vmem:[#allocation2 + $0x100] sm:$0xff]  ;;  %v78_v19 = vld [vmem:[#allocation2 + $0x108] sm:$0xff]  ;;  %v176_v21 = vunpack.c.l.bf16 %v45_v17  ;;  %v79_v45 = vld [vmem:[#allocation2 + $0x110] sm:$0xff] }
  0x41   :  { %1205 = vmatpush.bf16.msrb.mxu2 %v2203_v36  ;;  %v2201_v36 = vld [vmem:[#allocation5 + $0x80] sm:$0xff]  ;;  %v80_v46 = vld [vmem:[#allocation2 + $0x118] sm:$0xff] }
  0x42   :  { %1294 = vmatpush.bf16.msrb.mxu3 %v2211_v37  ;;  %1383 = vmatpush.bf16.msrb.mxu0 %v496_v54  ;;  %v2209_v37 = vld [vmem:[#allocation5 + $0xc0] sm:$0xff]  ;;  %v494_v54 = vpack.c.bf16 %v463_v51, %v462_v50  ;;  %v180_v50 = vunpack.c.l.bf16 %v47_v44  ;;  %v242_v51 = vunpack.c.l.bf16 %v79_v45 }
  0x43   :  { %1472 = vmatpush.bf16.msrb.mxu1 %v504_v57  ;;  %v502_v57 = vpack.c.bf16 %v479_v53, %v478_v52  ;;  %v244_v52 = vunpack.c.l.bf16 %v80_v46  ;;  %v179_v53 = vunpack.c.h.bf16 %v46_v43 }
  0x45   :  { %1206 = vmatpush.bf16.msrb.mxu2 %v2202_v4  ;;  %v1795_v4 = vld [vmem:[#allocation2 + $0x70] sm:$0xf] }
  0x46   :  { %1295 = vmatpush.bf16.msrb.mxu3 %v2210_v5  ;;  %1384 = vmatpush.bf16.msrb.mxu0 %v495_v22  ;;  %v2136_v5 = vld [vmem:[#allocation2 + $0x74] sm:$0xf0]  ;;  %v238_v22 = vunpack.c.l.bf16 %v77_v18 }
  0x47   :  { %1473 = vmatpush.bf16.msrb.mxu1 %v503_v25  ;;  %v1796_v12 = vor.u32 %v2136_v5, %v1795_v4  ;;  %v177_v25 = vunpack.c.h.bf16 %v45_v17  ;;  %v1941_v4 = vld [vmem:[#allocation2 + $0x118] sm:$0xf0]  ;;  %v81_v17 = vld [vmem:[#allocation2 + $0x120] sm:$0xff] }
  0x49   :  { %1207 = vmatpush.bf16.msrb.mxu2 %v2201_v36 }
  0x4a   :  { %1296 = vmatpush.bf16.msrb.mxu3 %v2209_v37  ;;  %1385 = vmatpush.bf16.msrb.mxu0 %v494_v54 }
  0x4b   :  { %1474 = vmatpush.bf16.msrb.mxu1 %v502_v57  ;;  %v243_v57 = vunpack.c.h.bf16 %v79_v45 }
  0x4c   :  { %784 = vmatmul.bf16.gmra.mxu0 %v1756_v0  ;;  %824 = vmatmul.bf16.gmra.mxu2 %v1820_v1  ;;  %v1772_v0 = vor.u32 %v2130_v56, %v1771_v55  ;;  %v1836_v1 = vor.u32 %v2146_v59, %v1835_v58  ;;  %v1787_v55 = vld [vmem:[#allocation2 + $0x60] sm:$0xf]  ;;  %v2134_v56 = vld [vmem:[#allocation2 + $0x64] sm:$0xf0] }
  0x4d   :  { %873 = vmatmul.bf16.gmra.mxu1 %v1760_v2  ;;  %v1776_v2 = vor.u32 %v2129_v60, %v1773_v61  ;;  %v1851_v58 = vld [vmem:[#allocation2 + $0xe0] sm:$0xf]  ;;  %v2150_v59 = vld [vmem:[#allocation2 + $0xe4] sm:$0xf0]  ;;  %v2133_v60 = vld [vmem:[#allocation2 + $0x64] sm:$0xf] }
  0x4e   :  { %v1789_v61 = vld [vmem:[#allocation2 + $0x68] sm:$0xf0] }
  0x4f   :  { %913 = vmatmul.bf16.gmra.mxu3 %v1824_v3  ;;  %v1840_v3 = vor.u32 %v2145_v62, %v1837_v63  ;;  %v2149_v62 = vld [vmem:[#allocation2 + $0xe4] sm:$0xf]  ;;  %v1853_v63 = vld [vmem:[#allocation2 + $0xe8] sm:$0xf0] }
  0x5c   :  { %789 = vmatmul.bf16.gmra.mxu0 %v1764_v32  ;;  %829 = vmatmul.bf16.gmra.mxu2 %v1828_v33  ;;  %v1780_v32 = vor.u32 %v2132_v24, %v1779_v23  ;;  %v1844_v33 = vor.u32 %v2148_v27, %v1843_v26  ;;  %v240_v23 = vunpack.c.l.bf16 %v78_v19  ;;  %v175_v24 = vunpack.c.h.bf16 %v44_v16  ;;  %v49_v16 = vld [vmem:[#allocation2 + $0x28] sm:$0xff] }
  0x5d   :  { %878 = vmatmul.bf16.gmra.mxu1 %v1768_v34  ;;  %v1784_v34 = vor.u32 %v2131_v28, %v1781_v29  ;;  %v239_v26 = vunpack.c.h.bf16 %v77_v18  ;;  %v241_v27 = vunpack.c.h.bf16 %v78_v19  ;;  %v302_v28 = vadd.f32 %v238_v22, %v174_v20  ;;  %v82_v18 = vld [vmem:[#allocation2 + $0x128] sm:$0xff] }
  0x5e   :  { %v304_v29 = vadd.f32 %v240_v23, %v176_v21  ;;  %v184_v22 = vunpack.c.l.bf16 %v49_v16  ;;  %v246_v23 = vunpack.c.l.bf16 %v81_v17 }
  0x5f   :  { %918 = vmatmul.bf16.gmra.mxu3 %v1832_v35  ;;  %v1848_v35 = vor.u32 %v2147_v30, %v1845_v31  ;;  %v1931_v30 = vld [vmem:[#allocation2 + $0x100] sm:$0xf]  ;;  %v2154_v31 = vld [vmem:[#allocation2 + $0x104] sm:$0xf0] }
  0x60   :  { %v1932_v36 = vor.u32 %v2154_v31, %v1931_v30  ;;  %v366_v37 = vpack.c.bf16 %v304_v29, %v302_v28  ;;  %v185_v28 = vunpack.c.h.bf16 %v49_v16  ;;  %v247_v29 = vunpack.c.h.bf16 %v81_v17  ;;  %v2159_v16 = vld [vmem:[#allocation2 + $0x134] sm:$0xf]  ;;  %v1957_v17 = vld [vmem:[#allocation2 + $0x138] sm:$0xf0] }
  0x61   :  { %v249_v30 = vunpack.c.h.bf16 %v82_v18 }
  0x6c   :  { %794 = vmatmul.bf16.gmra.mxu0 %v1772_v0  ;;  %834 = vmatmul.bf16.gmra.mxu2 %v1836_v1  ;;  %v1788_v0 = vor.u32 %v2134_v56, %v1787_v55  ;;  %v1852_v1 = vor.u32 %v2150_v59, %v1851_v58  ;;  %v181_v56 = vunpack.c.h.bf16 %v47_v44  ;;  %v245_v58 = vunpack.c.h.bf16 %v80_v46 }
  0x6d   :  { %883 = vmatmul.bf16.gmra.mxu1 %v1776_v2  ;;  %v1792_v2 = vor.u32 %v2133_v60, %v1789_v61  ;;  %v306_v61 = vadd.f32 %v242_v51, %v178_v48 }
  0x6f   :  { %923 = vmatmul.bf16.gmra.mxu3 %v1840_v3  ;;  %v1856_v3 = vor.u32 %v2149_v62, %v1853_v63  ;;  %v308_v62 = vadd.f32 %v244_v52, %v180_v50  ;;  %v1939_v63 = vld [vmem:[#allocation2 + $0x110] sm:$0xf] }
  0x70   :  { %v50_v52 = vld [vmem:[#allocation2 + $0x30] sm:$0xff] }
  0x71   :  { %v368_v8 = vpack.c.bf16 %v308_v62, %v306_v61 }
  0x7c   :  { %799 = vmatmul.bf16.gmra.mxu0 %v1780_v32  ;;  %839 = vmatmul.bf16.gmra.mxu2 %v1844_v33  ;;  %v303_v32 = vadd.f32 %v239_v26, %v175_v24  ;;  %v305_v33 = vadd.f32 %v241_v27, %v177_v25  ;;  %v248_v24 = vunpack.c.l.bf16 %v82_v18 }
  0x7d   :  { %888 = vmatmul.bf16.gmra.mxu1 %v1784_v34  ;;  %v2153_v34 = vld [vmem:[#allocation2 + $0x104] sm:$0xf] }
  0x7e   :  { %v367_v40 = vpack.c.bf16 %v305_v33, %v303_v32 }
  0x7f   :  { %928 = vmatmul.bf16.gmra.mxu3 %v1848_v35  ;;  %v1933_v35 = vld [vmem:[#allocation2 + $0x108] sm:$0xf0] }
  0x80   :  { %v1936_v39 = vor.u32 %v2153_v34, %v1933_v35  ;;  %v312_v34 = vadd.f32 %v248_v24, %v184_v22  ;;  %v1947_v35 = vld [vmem:[#allocation2 + $0x120] sm:$0xf]  ;;  %v1960_v24 = vor.u32 %v2159_v16, %v1957_v17 }
  0x8c   :  { %804 = vmatmul.bf16.gmra.mxu0 %v1788_v0  ;;  %844 = vmatmul.bf16.gmra.mxu2 %v1852_v1  ;;  %v2156_v0 = vld [vmem:[#allocation2 + $0x114] sm:$0xf0]  ;;  %v307_v1 = vadd.f32 %v243_v57, %v179_v53 }
  0x8d   :  { %893 = vmatmul.bf16.gmra.mxu1 %v1792_v2  ;;  %v309_v2 = vadd.f32 %v245_v58, %v181_v56  ;;  %v1940_v7 = vor.u32 %v2156_v0, %v1939_v63  ;;  %v51_v53 = vld [vmem:[#allocation2 + $0x38] sm:$0xff]  ;;  %v186_v58 = vunpack.c.l.bf16 %v50_v52  ;;  %v187_v0 = vunpack.c.h.bf16 %v50_v52 }
  0x8e   :  { %v84_v56 = vld [vmem:[#allocation2 + $0x138] sm:$0xff]  ;;  %v188_v61 = vunpack.c.l.bf16 %v51_v53 }
  0x8f   :  { %933 = vmatmul.bf16.gmra.mxu3 %v1856_v3  ;;  %v2155_v3 = vld [vmem:[#allocation2 + $0x114] sm:$0xf]  ;;  %v252_v63 = vunpack.c.l.bf16 %v84_v56 }
  0x90   :  { %v1944_v11 = vor.u32 %v2155_v3, %v1941_v4  ;;  %v189_v3 = vunpack.c.h.bf16 %v51_v53  ;;  %v1963_v53 = vld [vmem:[#allocation2 + $0x140] sm:$0xf] }
  0x9c   :  { %809 = vmatmul.bf16.gmra.mxu0 %v1796_v12  ;;  %849 = vmatmul.bf16.gmra.mxu2 %v1860_v13  ;;  %v369_v12 = vpack.c.bf16 %v309_v2, %v307_v1 }
  0x9d   :  { %898 = vmatmul.bf16.gmra.mxu1 %v1800_v14 }
  0x9f   :  { %938 = vmatmul.bf16.gmra.mxu3 %v1864_v15  ;;  %v48_v15 = vld [vmem:[#allocation2 + $0x20] sm:$0xff] }
  0xa0   :  { %v182_v20 = vunpack.c.l.bf16 %v48_v15  ;;  %v183_v25 = vunpack.c.h.bf16 %v48_v15 }
  0xa2   :  { %v310_v33 = vadd.f32 %v246_v23, %v182_v20 }
  0xa4   :  { %v370_v45 = vpack.c.bf16 %v312_v34, %v310_v33  ;;  %v86_v33 = vld [vmem:[#allocation2 + $0x148] sm:$0xff] }
  0xa9   :  { %v775_v38 = vpop.f32.mrf.mxu0 }
  0xaa   :  { %v864_v41 = vpop.f32.mrf.mxu1 }
  0xab   :  { %v2349_v42 = vadd.f32 %v864_v41, %v775_v38  ;;  %v313_v38 = vadd.f32 %v249_v30, %v185_v28  ;;  %v53_v30 = vld [vmem:[#allocation2 + $0x48] sm:$0xff] }
  0xac   :  { %1208 = vmatmul.bf16.vlgmr.msrb.gmra.mxu2 %v1932_v36  ;;  %1386 = vmatmul.bf16.vlgmr.msrb.gmra.mxu0 %v366_v37  ;;  %v2158_v36 = vld [vmem:[#allocation2 + $0x124] sm:$0xf0]  ;;  %v311_v37 = vadd.f32 %v247_v29, %v183_v25  ;;  %v52_v29 = vld [vmem:[#allocation2 + $0x40] sm:$0xff] }
  0xad   :  { %1475 = vmatmul.bf16.vlgmr.msrb.gmra.mxu1 %v367_v40  ;;  %v1949_v40 = vld [vmem:[#allocation2 + $0x128] sm:$0xf0]  ;;  %v1948_v44 = vor.u32 %v2158_v36, %v1947_v35  ;;  %v190_v35 = vunpack.c.l.bf16 %v52_v29 }
  0xaf   :  { %1297 = vmatmul.bf16.vlgmr.msrb.gmra.mxu3 %v1936_v39  ;;  %v815_v47 = vpop.f32.mrf.mxu2  ;;  %v2157_v39 = vld [vmem:[#allocation2 + $0x124] sm:$0xf] }
  0xb0   :  { %v1952_v48 = vor.u32 %v2157_v39, %v1949_v40  ;;  %v256_v39 = vunpack.c.l.bf16 %v86_v33  ;;  %v191_v40 = vunpack.c.h.bf16 %v52_v29 }
  0xb1   :  { %v777_v55 = vpop.f32.mrf.mxu0 }
  0xb2   :  { %v904_v49 = vpop.f32.mrf.mxu3  ;;  %v866_v59 = vpop.f32.mrf.mxu1 }
  0xb3   :  { %v2351_v54 = vadd.f32 %v904_v49, %v815_v47  ;;  %v2353_v60 = vadd.f32 %v866_v59, %v777_v55  ;;  %v371_v49 = vpack.c.bf16 %v313_v38, %v311_v37  ;;  %v83_v55 = vld [vmem:[#allocation2 + $0x130] sm:$0xff]  ;;  %v192_v37 = vunpack.c.l.bf16 %v53_v30 }
  0xb4   :  { %v250_v62 = vunpack.c.l.bf16 %v83_v55  ;;  %v251_v4 = vunpack.c.h.bf16 %v83_v55  ;;  %v2162_v55 = vld [vmem:[#allocation2 + $0x144] sm:$0xf0] }
  0xb5   :  { %v320_v52 = vadd.f32 %v256_v39, %v192_v37  ;;  %v2163_v39 = vld [vmem:[#allocation2 + $0x154] sm:$0xf] }
  0xb7   :  { %v817_v5 = vpop.f32.mrf.mxu2 }
  0xb9   :  { %v780_v10 = vpop.f32.mrf.mxu0 }
  0xba   :  { %v906_v6 = vpop.f32.mrf.mxu3  ;;  %v869_v13 = vpop.f32.mrf.mxu1 }
  0xbb   :  { %v2355_v9 = vadd.f32 %v906_v6, %v817_v5  ;;  %v2357_v14 = vadd.f32 %v869_v13, %v780_v10  ;;  %v253_v5 = vunpack.c.h.bf16 %v84_v56  ;;  %v316_v10 = vadd.f32 %v252_v63, %v188_v61 }
  0xbc   :  { %1213 = vmatmul.bf16.gmra.mxu2 %v1940_v7  ;;  %1391 = vmatmul.bf16.gmra.mxu0 %v368_v8  ;;  %v314_v8 = vadd.f32 %v250_v62, %v186_v58  ;;  %v315_v13 = vadd.f32 %v251_v4, %v187_v0  ;;  %v2161_v58 = vld [vmem:[#allocation2 + $0x144] sm:$0xf]  ;;  %v1964_v63 = vor.u32 %v2162_v55, %v1963_v53 }
  0xbd   :  { %1480 = vmatmul.bf16.gmra.mxu1 %v369_v12  ;;  %v2160_v12 = vld [vmem:[#allocation2 + $0x134] sm:$0xf0]  ;;  %v317_v15 = vadd.f32 %v253_v5, %v189_v3 }
  0xbf   :  { %1302 = vmatmul.bf16.gmra.mxu3 %v1944_v11  ;;  %v820_v19 = vpop.f32.mrf.mxu2  ;;  %v1955_v11 = vld [vmem:[#allocation2 + $0x130] sm:$0xf]  ;;  %v373_v25 = vpack.c.bf16 %v317_v15, %v315_v13  ;;  %v88_v13 = vld [vmem:[#allocation2 + $0x158] sm:$0xff] }
  0xc0   :  { %v1956_v20 = vor.u32 %v2160_v12, %v1955_v11  ;;  %v55_v11 = vld [vmem:[#allocation2 + $0x58] sm:$0xff]  ;;  %v87_v12 = vld [vmem:[#allocation2 + $0x150] sm:$0xff]  ;;  %v261_v29 = vunpack.c.h.bf16 %v88_v13 }
  0xc1   :  { %v782_v27 = vpop.f32.mrf.mxu0 }
  0xc2   :  { %v909_v21 = vpop.f32.mrf.mxu3  ;;  %v871_v31 = vpop.f32.mrf.mxu1 }
  0xc3   :  { %v2359_v26 = vadd.f32 %v909_v21, %v820_v19  ;;  %v2361_v32 = vadd.f32 %v871_v31, %v782_v27  ;;  %v372_v21 = vpack.c.bf16 %v316_v10, %v314_v8  ;;  %v85_v31 = vld [vmem:[#allocation2 + $0x140] sm:$0xff]  ;;  %v54_v10 = vld [vmem:[#allocation2 + $0x50] sm:$0xff] }
  0xc4   :  { %v254_v38 = vunpack.c.l.bf16 %v85_v31  ;;  %v194_v16 = vunpack.c.l.bf16 %v54_v10 }
  0xc7   :  { %v822_v41 = vpop.f32.mrf.mxu2 }
  0xc9   :  { %v785_v47 = vpop.f32.mrf.mxu0 }
  0xca   :  { %v911_v43 = vpop.f32.mrf.mxu3  ;;  %v874_v50 = vpop.f32.mrf.mxu1 }
  0xcb   :  { %v2363_v46 = vadd.f32 %v911_v43, %v822_v41  ;;  %v2365_v51 = vadd.f32 %v874_v50, %v785_v47  ;;  %v257_v47 = vunpack.c.h.bf16 %v86_v33  ;;  %v318_v50 = vadd.f32 %v254_v38, %v190_v35  ;;  %v1971_v35 = vld [vmem:[#allocation2 + $0x150] sm:$0xf] }
  0xcc   :  { %1218 = vmatmul.bf16.gmra.mxu2 %v1948_v44  ;;  %1396 = vmatmul.bf16.gmra.mxu0 %v370_v45  ;;  %v193_v44 = vunpack.c.h.bf16 %v53_v30  ;;  %v255_v45 = vunpack.c.h.bf16 %v85_v31 }
  0xcd   :  { %1485 = vmatmul.bf16.gmra.mxu1 %v371_v49  ;;  %v374_v0 = vpack.c.bf16 %v320_v52, %v318_v50 }
  0xce   :  { %v319_v56 = vadd.f32 %v255_v45, %v191_v40  ;;  %v1973_v40 = vld [vmem:[#allocation2 + $0x158] sm:$0xf0] }
  0xcf   :  { %1307 = vmatmul.bf16.gmra.mxu3 %v1952_v48  ;;  %v825_v57 = vpop.f32.mrf.mxu2  ;;  %v1976_v52 = vor.u32 %v2163_v39, %v1973_v40 }
  0xd1   :  { %v787_v2 = vpop.f32.mrf.mxu0 }
  0xd2   :  { %v914_v59 = vpop.f32.mrf.mxu3  ;;  %v876_v6 = vpop.f32.mrf.mxu1 }
  0xd3   :  { %v2367_v1 = vadd.f32 %v914_v59, %v825_v57  ;;  %v2369_v7 = vadd.f32 %v876_v6, %v787_v2  ;;  %v321_v57 = vadd.f32 %v257_v47, %v193_v44  ;;  %v1965_v59 = vld [vmem:[#allocation2 + $0x148] sm:$0xf0] }
  0xd4   :  { %v1968_v4 = vor.u32 %v2161_v58, %v1965_v59  ;;  %v57_v58 = vld [vmem:[#allocation2 + $0x68] sm:$0xff]  ;;  %v89_v59 = vld [vmem:[#allocation2 + $0x160] sm:$0xff] }
  0xd5   :  { %v375_v5 = vpack.c.bf16 %v321_v57, %v319_v56  ;;  %v56_v57 = vld [vmem:[#allocation2 + $0x60] sm:$0xff] }
  0xd7   :  { %v827_v18 = vpop.f32.mrf.mxu2 }
  0xd9   :  { %v790_v23 = vpop.f32.mrf.mxu0 }
  0xda   :  { %v916_v19 = vpop.f32.mrf.mxu3  ;;  %v879_v27 = vpop.f32.mrf.mxu1 }
  0xdb   :  { %v2371_v22 = vadd.f32 %v916_v19, %v827_v18  ;;  %v2373_v28 = vadd.f32 %v879_v27, %v790_v23  ;;  %v196_v18 = vunpack.c.l.bf16 %v55_v11  ;;  %v258_v19 = vunpack.c.l.bf16 %v87_v12 }
  0xdc   :  { %1223 = vmatmul.bf16.gmra.mxu2 %v1956_v20  ;;  %1401 = vmatmul.bf16.gmra.mxu0 %v372_v21  ;;  %v260_v20 = vunpack.c.l.bf16 %v88_v13  ;;  %v195_v21 = vunpack.c.h.bf16 %v54_v10  ;;  %v259_v27 = vunpack.c.h.bf16 %v87_v12  ;;  %v201_v12 = vunpack.c.h.bf16 %v57_v58 }
  0xdd   :  { %1490 = vmatmul.bf16.gmra.mxu1 %v373_v25  ;;  %v197_v25 = vunpack.c.h.bf16 %v55_v11  ;;  %v322_v33 = vadd.f32 %v258_v19, %v194_v16  ;;  %v263_v13 = vunpack.c.h.bf16 %v89_v59 }
  0xde   :  { %v323_v37 = vadd.f32 %v259_v27, %v195_v21  ;;  %v2166_v21 = vld [vmem:[#allocation2 + $0x164] sm:$0xf0]  ;;  %v2165_v27 = vld [vmem:[#allocation2 + $0x164] sm:$0xf] }
  0xdf   :  { %1312 = vmatmul.bf16.gmra.mxu3 %v1960_v24  ;;  %v830_v34 = vpop.f32.mrf.mxu2  ;;  %v325_v38 = vadd.f32 %v261_v29, %v197_v25  ;;  %v1981_v29 = vld [vmem:[#allocation2 + $0x168] sm:$0xf0] }
  0xe1   :  { %v792_v43 = vpop.f32.mrf.mxu0  ;;  %v377_v53 = vpack.c.bf16 %v325_v38, %v323_v37  ;;  %v1984_v38 = vor.u32 %v2165_v27, %v1981_v29 }
  0xe2   :  { %v919_v36 = vpop.f32.mrf.mxu3  ;;  %v881_v48 = vpop.f32.mrf.mxu1 }
  0xe3   :  { %v2375_v41 = vadd.f32 %v919_v36, %v830_v34  ;;  %v2377_v49 = vadd.f32 %v881_v48, %v792_v43  ;;  %v324_v34 = vadd.f32 %v260_v20, %v196_v18  ;;  %v2164_v36 = vld [vmem:[#allocation2 + $0x154] sm:$0xf0]  ;;  %v1979_v20 = vld [vmem:[#allocation2 + $0x160] sm:$0xf] }
  0xe4   :  { %v1972_v45 = vor.u32 %v2164_v36, %v1971_v35 }
  0xe5   :  { %v376_v47 = vpack.c.bf16 %v324_v34, %v322_v33  ;;  %v1980_v34 = vor.u32 %v2166_v21, %v1979_v20  ;;  %v1989_v20 = vld [vmem:[#allocation2 + $0x178] sm:$0xf0] }
  0xe7   :  { %v832_v61 = vpop.f32.mrf.mxu2 }
  0xe9   :  { %v795_v3 = vpop.f32.mrf.mxu0 }
  0xea   :  { %v921_v62 = vpop.f32.mrf.mxu3  ;;  %v884_v6 = vpop.f32.mrf.mxu1 }
  0xeb   :  { %v2379_v2 = vadd.f32 %v921_v62, %v832_v61  ;;  %v2381_v8 = vadd.f32 %v884_v6, %v795_v3  ;;  %v90_v61 = vld [vmem:[#allocation2 + $0x168] sm:$0xff]  ;;  %v200_v3 = vunpack.c.l.bf16 %v57_v58  ;;  %v199_v6 = vunpack.c.h.bf16 %v56_v57 }
  0xec   :  { %1228 = vmatmul.bf16.gmra.mxu2 %v1964_v63  ;;  %1406 = vmatmul.bf16.gmra.mxu0 %v374_v0  ;;  %v198_v63 = vunpack.c.l.bf16 %v56_v57 }
  0xed   :  { %1495 = vmatmul.bf16.gmra.mxu1 %v375_v5  ;;  %v264_v5 = vunpack.c.l.bf16 %v90_v61 }
  0xef   :  { %1317 = vmatmul.bf16.gmra.mxu3 %v1968_v4  ;;  %v835_v15 = vpop.f32.mrf.mxu2  ;;  %v262_v4 = vunpack.c.l.bf16 %v89_v59  ;;  %v328_v19 = vadd.f32 %v264_v5, %v200_v3 }
  0xf1   :  { %v797_v24 = vpop.f32.mrf.mxu0  ;;  %v326_v18 = vadd.f32 %v262_v4, %v198_v63 }
  0xf2   :  { %v924_v17 = vpop.f32.mrf.mxu3  ;;  %v886_v30 = vpop.f32.mrf.mxu1 }
  0xf3   :  { %v2383_v23 = vadd.f32 %v924_v17, %v835_v15  ;;  %v2385_v31 = vadd.f32 %v886_v30, %v797_v24  ;;  %v265_v15 = vunpack.c.h.bf16 %v90_v61  ;;  %v327_v24 = vadd.f32 %v263_v13, %v199_v6  ;;  %v1987_v13 = vld [vmem:[#allocation2 + $0x170] sm:$0xf] }
  0xf4   :  { %v378_v35 = vpack.c.bf16 %v328_v19, %v326_v18  ;;  %v2167_v19 = vld [vmem:[#allocation2 + $0x174] sm:$0xf] }
  0xf5   :  { %v329_v25 = vadd.f32 %v265_v15, %v201_v12  ;;  %v2168_v15 = vld [vmem:[#allocation2 + $0x174] sm:$0xf0] }
  0xf7   :  { %v837_v43 = vpop.f32.mrf.mxu2  ;;  %v379_v39 = vpack.c.bf16 %v329_v25, %v327_v24  ;;  %v1988_v25 = vor.u32 %v2168_v15, %v1987_v13  ;;  %v2170_v13 = vld [vmem:[#allocation2 + $0x184] sm:$0xf0] }
  0xf9   :  { %v800_v50 = vpop.f32.mrf.mxu0 }
  0xfa   :  { %v926_v44 = vpop.f32.mrf.mxu3  ;;  %v889_v55 = vpop.f32.mrf.mxu1 }
  0xfb   :  { %v2387_v48 = vadd.f32 %v926_v44, %v837_v43  ;;  %v2389_v56 = vadd.f32 %v889_v55, %v800_v50  ;;  %v58_v44 = vld [vmem:[#allocation2 + $0x70] sm:$0xff]  ;;  %v92_v50 = vld [vmem:[#allocation2 + $0x178] sm:$0xff] }
  0xfc   :  { %1233 = vmatmul.bf16.gmra.mxu2 %v1972_v45  ;;  %1411 = vmatmul.bf16.gmra.mxu0 %v376_v47  ;;  %v59_v45 = vld [vmem:[#allocation2 + $0x78] sm:$0xff]  ;;  %v91_v47 = vld [vmem:[#allocation2 + $0x170] sm:$0xff]  ;;  %v268_v59 = vunpack.c.l.bf16 %v92_v50  ;;  %v203_v61 = vunpack.c.h.bf16 %v58_v44  ;;  %v269_v4 = vunpack.c.h.bf16 %v92_v50 }
  0xfd   :  { %1500 = vmatmul.bf16.gmra.mxu1 %v377_v53  ;;  %v202_v53 = vunpack.c.l.bf16 %v58_v44  ;;  %v204_v57 = vunpack.c.l.bf16 %v59_v45  ;;  %v266_v58 = vunpack.c.l.bf16 %v91_v47  ;;  %v267_v3 = vunpack.c.h.bf16 %v91_v47  ;;  %v94_v44 = vld [vmem:[#allocation2 + $0x188] sm:$0xff] }
  0xff   :  { %1322 = vmatmul.bf16.gmra.mxu3 %v1976_v52  ;;  %v840_v62 = vpop.f32.mrf.mxu2  ;;  %v332_v12 = vadd.f32 %v268_v59, %v204_v57 }
 0x101   :  { %v802_v11 = vpop.f32.mrf.mxu0 }
 0x102   :  { %v929_v0 = vpop.f32.mrf.mxu3  ;;  %v891_v16 = vpop.f32.mrf.mxu1 }
 0x103   :  { %v2391_v10 = vadd.f32 %v929_v0, %v840_v62  ;;  %v2393_v17 = vadd.f32 %v891_v16, %v802_v11  ;;  %v205_v0 = vunpack.c.h.bf16 %v59_v45  ;;  %v330_v11 = vadd.f32 %v266_v58, %v202_v53 }
 0x104   :  { %v331_v16 = vadd.f32 %v267_v3, %v203_v61 }
 0x105   :  { %v333_v18 = vadd.f32 %v269_v4, %v205_v0  ;;  %v380_v27 = vpack.c.bf16 %v332_v12, %v330_v11  ;;  %v273_v0 = vunpack.c.h.bf16 %v94_v44  ;;  %v1995_v12 = vld [vmem:[#allocation2 + $0x180] sm:$0xf] }
 0x107   :  { %v842_v30 = vpop.f32.mrf.mxu2 }
 0x109   :  { %v805_v37 = vpop.f32.mrf.mxu0 }
 0x10a   :  { %v931_v33 = vpop.f32.mrf.mxu3  ;;  %v894_v40 = vpop.f32.mrf.mxu1 }
 0x10b   :  { %v2395_v36 = vadd.f32 %v931_v33, %v842_v30  ;;  %v2397_v43 = vadd.f32 %v894_v40, %v805_v37  ;;  %v1992_v33 = vor.u32 %v2167_v19, %v1989_v20  ;;  %v93_v40 = vld [vmem:[#allocation2 + $0x180] sm:$0xff]  ;;  %v1997_v19 = vld [vmem:[#allocation2 + $0x188] sm:$0xf0] }
 0x10c   :  { %1238 = vmatmul.bf16.gmra.mxu2 %v1980_v34  ;;  %1416 = vmatmul.bf16.gmra.mxu0 %v378_v35  ;;  %v381_v34 = vpack.c.bf16 %v333_v18, %v331_v16  ;;  %v270_v53 = vunpack.c.l.bf16 %v93_v40  ;;  %v2169_v18 = vld [vmem:[#allocation2 + $0x184] sm:$0xf] }
 0x10d   :  { %1505 = vmatmul.bf16.gmra.mxu1 %v379_v39  ;;  %v61_v39 = vld [vmem:[#allocation2 + $0x88] sm:$0xff] }
 0x10e   :  { %v209_v61 = vunpack.c.h.bf16 %v61_v39 }
 0x10f   :  { %1327 = vmatmul.bf16.gmra.mxu3 %v1984_v38  ;;  %v845_v52 = vpop.f32.mrf.mxu2  ;;  %v60_v38 = vld [vmem:[#allocation2 + $0x80] sm:$0xff] }
 0x110   :  { %v206_v47 = vunpack.c.l.bf16 %v60_v38  ;;  %v207_v57 = vunpack.c.h.bf16 %v60_v38  ;;  %v337_v16 = vadd.f32 %v273_v0, %v209_v61  ;;  %v62_v38 = vld [vmem:[#allocation2 + $0x90] sm:$0xff] }
 0x111   :  { %v807_v63 = vpop.f32.mrf.mxu0 }
 0x112   :  { %v934_v55 = vpop.f32.mrf.mxu3  ;;  %v896_v5 = vpop.f32.mrf.mxu1 }
 0x113   :  { %v2399_v62 = vadd.f32 %v934_v55, %v845_v52  ;;  %v2401_v6 = vadd.f32 %v896_v5, %v807_v63  ;;  %v208_v52 = vunpack.c.l.bf16 %v61_v39  ;;  %v272_v55 = vunpack.c.l.bf16 %v94_v44  ;;  %v63_v39 = vld [vmem:[#allocation2 + $0x98] sm:$0xff]  ;;  %v95_v44 = vld [vmem:[#allocation2 + $0x190] sm:$0xff] }
 0x114   :  { %v271_v63 = vunpack.c.h.bf16 %v93_v40  ;;  %v334_v5 = vadd.f32 %v270_v53, %v206_v47  ;;  %v213_v61 = vunpack.c.h.bf16 %v63_v39 }
 0x115   :  { %v336_v11 = vadd.f32 %v272_v55, %v208_v52  ;;  %v212_v52 = vunpack.c.l.bf16 %v63_v39  ;;  %v274_v55 = vunpack.c.l.bf16 %v95_v44 }
 0x116   :  { %v335_v15 = vadd.f32 %v271_v63, %v207_v57 }
 0x117   :  { %v847_v21 = vpop.f32.mrf.mxu2 }
 0x119   :  { %v810_v30 = vpop.f32.mrf.mxu0 }
 0x11a   :  { %v936_v24 = vpop.f32.mrf.mxu3  ;;  %v899_v35 = vpop.f32.mrf.mxu1 }
 0x11b   :  { %v2403_v29 = vadd.f32 %v936_v24, %v847_v21  ;;  %v2405_v37 = vadd.f32 %v899_v35, %v810_v30  ;;  %v1996_v24 = vor.u32 %v2170_v13, %v1995_v12 }
 0x11c   :  { %1243 = vmatmul.bf16.gmra.mxu2 %v1988_v25  ;;  %1421 = vmatmul.bf16.gmra.mxu0 %v380_v27  ;;  %v382_v25 = vpack.c.bf16 %v336_v11, %v334_v5  ;;  %v275_v5 = vunpack.c.h.bf16 %v95_v44 }
 0x11d   :  { %1510 = vmatmul.bf16.gmra.mxu1 %v381_v34  ;;  %v383_v34 = vpack.c.bf16 %v337_v16, %v335_v15 }
 0x11f   :  { %1332 = vmatmul.bf16.gmra.mxu3 %v1992_v33  ;;  %v850_v45 = vpop.f32.mrf.mxu2  ;;  %v2000_v33 = vor.u32 %v2169_v18, %v1997_v19 }
 0x121   :  { %v812_v59 = vpop.f32.mrf.mxu0 }
 0x122   :  { %v939_v50 = vpop.f32.mrf.mxu3  ;;  %v901_v3 = vpop.f32.mrf.mxu1 }
 0x123   :  { %v2407_v58 = vadd.f32 %v939_v50, %v850_v45  ;;  %v2409_v4 = vadd.f32 %v901_v3, %v812_v59  ;;  %v96_v45 = vld [vmem:[#allocation2 + $0x198] sm:$0xff]  ;;  %v210_v50 = vunpack.c.l.bf16 %v62_v38  ;;  %v211_v59 = vunpack.c.h.bf16 %v62_v38 }
 0x124   :  { %v276_v57 = vunpack.c.l.bf16 %v96_v45  ;;  %v277_v11 = vunpack.c.h.bf16 %v96_v45 }
 0x125   :  { %v338_v16 = vadd.f32 %v274_v55, %v210_v50  ;;  %v64_v55 = vld [vmem:[#allocation2 + $0xa0] sm:$0xff] }
 0x126   :  { %v340_v18 = vadd.f32 %v276_v57, %v212_v52  ;;  %v65_v57 = vld [vmem:[#allocation2 + $0xa8] sm:$0xff] }
 0x127   :  { %v852_v20 = vpop.f32.mrf.mxu2 }
 0x128   :  { %v384_v39 = vpack.c.bf16 %v340_v18, %v338_v16 }
 0x129   :  { %v1387_v30 = vpop.f32.mrf.mxu0 }
 0x12a   :  { %v941_v21 = vpop.f32.mrf.mxu3  ;;  %v1476_v35 = vpop.f32.mrf.mxu1 }
 0x12b   :  { %v2411_v27 = vadd.f32 %v941_v21, %v852_v20  ;;  %v1477_v40 = vadd.f32 %v1476_v35, %v1387_v30  ;;  %v2003_v20 = vld [vmem:[#allocation2 + $0x190] sm:$0xf]  ;;  %v2172_v21 = vld [vmem:[#allocation2 + $0x194] sm:$0xf0]  ;;  %v2171_v30 = vld [vmem:[#allocation2 + $0x194] sm:$0xf] }
 0x12c   :  { %1248 = vmatmul.bf16.gmra.mxu2 %v1996_v24  ;;  %1426 = vmatmul.bf16.gmra.mxu0 %v382_v25  ;;  %v339_v24 = vadd.f32 %v275_v5, %v211_v59  ;;  %v341_v25 = vadd.f32 %v277_v11, %v213_v61  ;;  %v2004_v38 = vor.u32 %v2172_v21, %v2003_v20  ;;  %v97_v61 = vld [vmem:[#allocation2 + $0x1a0] sm:$0xff]  ;;  %v216_v5 = vunpack.c.l.bf16 %v65_v57 }
 0x12d   :  { %1515 = vmatmul.bf16.gmra.mxu1 %v383_v34  ;;  %v1620_v63 = vsub.f32 %v1477_v40, %v2349_v42  ;;  %v279_v20 = vunpack.c.h.bf16 %v97_v61 }
 0x12f   :  { %1337 = vmatmul.bf16.gmra.mxu3 %v2000_v33  ;;  %v1209_v47 = vpop.f32.mrf.mxu2  ;;  %v2005_v33 = vld [vmem:[#allocation2 + $0x198] sm:$0xf0] }
 0x130   :  { %v2008_v45 = vor.u32 %v2171_v30, %v2005_v33 }
 0x131   :  { %v1389_v3 = vpop.f32.mrf.mxu0 }
 0x132   :  { %v1298_v53 = vpop.f32.mrf.mxu3  ;;  %v1478_v12 = vpop.f32.mrf.mxu1 }
 0x133   :  { %v1299_v0 = vadd.f32 %v1298_v53, %v1209_v47  ;;  %v1479_v19 = vadd.f32 %v1478_v12, %v1389_v3  ;;  %v385_v47 = vpack.c.bf16 %v341_v25, %v339_v24  ;;  %v214_v3 = vunpack.c.l.bf16 %v64_v55 }
 0x134   :  { %v278_v12 = vunpack.c.l.bf16 %v97_v61 }
 0x135   :  { %v1556_v13 = vsub.f32 %v2349_v42, %v1299_v0  ;;  %v1652_v15 = vsub.f32 %v1620_v63, %v1299_v0  ;;  %v1621_v40 = vsub.f32 %v1479_v19, %v2353_v60  ;;  %v98_v63 = vld [vmem:[#allocation2 + $0x1a8] sm:$0xff] }
 0x136   :  { %v281_v21 = vunpack.c.h.bf16 %v98_v63  ;;  %v342_v33 = vadd.f32 %v278_v12, %v214_v3 }
 0x137   :  { %1588 = vst [vmem:[#allocation7] sm:$0xff] %v1556_v13  ;;  %v1211_v34 = vpop.f32.mrf.mxu2  ;;  %v280_v13 = vunpack.c.l.bf16 %v98_v63 }
 0x138   :  { %1685 = vst [vmem:[#allocation7 + $0x100] sm:$0xff] %v1652_v15  ;;  %v215_v15 = vunpack.c.h.bf16 %v64_v55 }
 0x139   :  { %v1392_v42 = vpop.f32.mrf.mxu0 }
 0x13a   :  { %v1300_v35 = vpop.f32.mrf.mxu3  ;;  %v1481_v50 = vpop.f32.mrf.mxu1 }
 0x13b   :  { %v1301_v44 = vadd.f32 %v1300_v35, %v1211_v34  ;;  %v1482_v59 = vadd.f32 %v1481_v50, %v1392_v42  ;;  %v344_v34 = vadd.f32 %v280_v13, %v216_v5  ;;  %v2173_v42 = vld [vmem:[#allocation2 + $0x1a4] sm:$0xf]  ;;  %v66_v5 = vld [vmem:[#allocation2 + $0xb0] sm:$0xff] }
 0x13c   :  { %1253 = vmatmul.bf16.gmra.mxu2 %v2004_v38  ;;  %1431 = vmatmul.bf16.gmra.mxu0 %v384_v39  ;;  %v2011_v38 = vld [vmem:[#allocation2 + $0x1a0] sm:$0xf]  ;;  %v2174_v39 = vld [vmem:[#allocation2 + $0x1a4] sm:$0xf0]  ;;  %v99_v13 = vld [vmem:[#allocation2 + $0x1b0] sm:$0xff] }
 0x13d   :  { %v1557_v52 = vsub.f32 %v2353_v60, %v1301_v44  ;;  %v1653_v53 = vsub.f32 %v1621_v40, %v1301_v44  ;;  %1520 = vmatmul.bf16.gmra.mxu1 %v385_v47  ;;  %v217_v60 = vunpack.c.h.bf16 %v65_v57  ;;  %v1622_v16 = vsub.f32 %v1482_v59, %v2357_v14 }
 0x13e   :  { %v343_v40 = vadd.f32 %v279_v20, %v215_v15  ;;  %v100_v15 = vld [vmem:[#allocation2 + $0x1b8] sm:$0xff]  ;;  %v282_v20 = vunpack.c.l.bf16 %v99_v13 }
 0x13f   :  { %1589 = vst [vmem:[#allocation7 + $0x8] sm:$0xff] %v1557_v52  ;;  %1342 = vmatmul.bf16.gmra.mxu3 %v2008_v45  ;;  %v1214_v0 = vpop.f32.mrf.mxu2  ;;  %v345_v44 = vadd.f32 %v281_v21, %v217_v60  ;;  %v2013_v45 = vld [vmem:[#allocation2 + $0x1a8] sm:$0xf0]  ;;  %v2012_v52 = vor.u32 %v2174_v39, %v2011_v38  ;;  %v284_v21 = vunpack.c.l.bf16 %v100_v15 }
 0x140   :  { %1686 = vst [vmem:[#allocation7 + $0x108] sm:$0xff] %v1653_v53  ;;  %v386_v53 = vpack.c.bf16 %v344_v34, %v342_v33  ;;  %v2016_v59 = vor.u32 %v2173_v42, %v2013_v45  ;;  %v283_v34 = vunpack.c.h.bf16 %v99_v13 }
 0x141   :  { %v1394_v19 = vpop.f32.mrf.mxu0  ;;  %v387_v61 = vpack.c.bf16 %v345_v44, %v343_v40 }
 0x142   :  { %v1303_v11 = vpop.f32.mrf.mxu3  ;;  %v1483_v24 = vpop.f32.mrf.mxu1 }
 0x143   :  { %v1304_v18 = vadd.f32 %v1303_v11, %v1214_v0  ;;  %v1484_v35 = vadd.f32 %v1483_v24, %v1394_v19  ;;  %v67_v11 = vld [vmem:[#allocation2 + $0xb8] sm:$0xff]  ;;  %v219_v24 = vunpack.c.h.bf16 %v66_v5 }
 0x145   :  { %v1558_v25 = vsub.f32 %v2357_v14, %v1304_v18  ;;  %v1654_v30 = vsub.f32 %v1622_v16, %v1304_v18  ;;  %v1623_v55 = vsub.f32 %v1484_v35, %v2361_v32  ;;  %v218_v16 = vunpack.c.l.bf16 %v66_v5 }
 0x146   :  { %v220_v18 = vunpack.c.l.bf16 %v67_v11  ;;  %v285_v35 = vunpack.c.h.bf16 %v100_v15 }
 0x147   :  { %1590 = vst [vmem:[#allocation7 + $0x10] sm:$0xff] %v1558_v25  ;;  %v1216_v47 = vpop.f32.mrf.mxu2  ;;  %v346_v44 = vadd.f32 %v282_v20, %v218_v16  ;;  %v69_v16 = vld [vmem:[#allocation2 + $0xc8] sm:$0xff] }
 0x148   :  { %1687 = vst [vmem:[#allocation7 + $0x110] sm:$0xff] %v1654_v30  ;;  %v348_v42 = vadd.f32 %v284_v21, %v220_v18  ;;  %v102_v20 = vld [vmem:[#allocation2 + $0x1c8] sm:$0xff] }
 0x149   :  { %v1397_v14 = vpop.f32.mrf.mxu0 }
 0x14a   :  { %v1305_v50 = vpop.f32.mrf.mxu3  ;;  %v1486_v63 = vpop.f32.mrf.mxu1 }
 0x14b   :  { %v1306_v57 = vadd.f32 %v1305_v50, %v1216_v47  ;;  %v1487_v12 = vadd.f32 %v1486_v63, %v1397_v14  ;;  %v2019_v47 = vld [vmem:[#allocation2 + $0x1b0] sm:$0xf]  ;;  %v2176_v50 = vld [vmem:[#allocation2 + $0x1b4] sm:$0xf0]  ;;  %v388_v63 = vpack.c.bf16 %v348_v42, %v346_v44  ;;  %v289_v44 = vunpack.c.h.bf16 %v102_v20 }
 0x14c   :  { %1258 = vmatmul.bf16.gmra.mxu2 %v2012_v52  ;;  %1436 = vmatmul.bf16.gmra.mxu0 %v386_v53  ;;  %v347_v52 = vadd.f32 %v283_v34, %v219_v24 }
 0x14d   :  { %v1559_v0 = vsub.f32 %v2361_v32, %v1306_v57  ;;  %v1655_v3 = vsub.f32 %v1623_v55, %v1306_v57  ;;  %1525 = vmatmul.bf16.gmra.mxu1 %v387_v61  ;;  %v221_v32 = vunpack.c.h.bf16 %v67_v11  ;;  %v1624_v25 = vsub.f32 %v1487_v12, %v2365_v51  ;;  %v2175_v55 = vld [vmem:[#allocation2 + $0x1b4] sm:$0xf]  ;;  %v2021_v57 = vld [vmem:[#allocation2 + $0x1b8] sm:$0xf0] }
 0x14e   :  { %v2020_v61 = vor.u32 %v2176_v50, %v2019_v47  ;;  %v2024_v5 = vor.u32 %v2175_v55, %v2021_v57  ;;  %v2027_v55 = vld [vmem:[#allocation2 + $0x1c0] sm:$0xf]  ;;  %v2178_v57 = vld [vmem:[#allocation2 + $0x1c4] sm:$0xf0] }
 0x14f   :  { %1591 = vst [vmem:[#allocation7 + $0x18] sm:$0xff] %v1559_v0  ;;  %1347 = vmatmul.bf16.gmra.mxu3 %v2016_v59  ;;  %v1219_v60 = vpop.f32.mrf.mxu2  ;;  %v349_v53 = vadd.f32 %v285_v35, %v221_v32  ;;  %v224_v32 = vunpack.c.l.bf16 %v69_v16 }
 0x150   :  { %1688 = vst [vmem:[#allocation7 + $0x118] sm:$0xff] %v1655_v3 }
 0x151   :  { %v1399_v33 = vpop.f32.mrf.mxu0  ;;  %v389_v11 = vpack.c.bf16 %v349_v53, %v347_v52 }
 0x152   :  { %v1308_v19 = vpop.f32.mrf.mxu3  ;;  %v1488_v38 = vpop.f32.mrf.mxu1 }
 0x153   :  { %v1309_v30 = vadd.f32 %v1308_v19, %v1219_v60  ;;  %v1489_v45 = vadd.f32 %v1488_v38, %v1399_v33  ;;  %v68_v60 = vld [vmem:[#allocation2 + $0xc0] sm:$0xff]  ;;  %v288_v33 = vunpack.c.l.bf16 %v102_v20  ;;  %v71_v20 = vld [vmem:[#allocation2 + $0xd8] sm:$0xff] }
 0x154   :  { %v101_v19 = vld [vmem:[#allocation2 + $0x1c0] sm:$0xff]  ;;  %v222_v24 = vunpack.c.l.bf16 %v68_v60  ;;  %v223_v34 = vunpack.c.h.bf16 %v68_v60 }
 0x155   :  { %v1560_v39 = vsub.f32 %v2365_v51, %v1309_v30  ;;  %v1656_v40 = vsub.f32 %v1624_v25, %v1309_v30  ;;  %v1625_v0 = vsub.f32 %v1489_v45, %v2369_v7  ;;  %v286_v30 = vunpack.c.l.bf16 %v101_v19 }
 0x156   :  { %v352_v52 = vadd.f32 %v288_v33, %v224_v32  ;;  %v104_v32 = vld [vmem:[#allocation2 + $0x1d8] sm:$0xff]  ;;  %v228_v33 = vunpack.c.l.bf16 %v71_v20 }
 0x157   :  { %1592 = vst [vmem:[#allocation7 + $0x20] sm:$0xff] %v1560_v39  ;;  %v1221_v14 = vpop.f32.mrf.mxu2  ;;  %v350_v50 = vadd.f32 %v286_v30, %v222_v24  ;;  %v103_v24 = vld [vmem:[#allocation2 + $0x1d0] sm:$0xff] }
 0x158   :  { %1689 = vst [vmem:[#allocation7 + $0x120] sm:$0xff] %v1656_v40  ;;  %v287_v40 = vunpack.c.h.bf16 %v101_v19  ;;  %v70_v19 = vld [vmem:[#allocation2 + $0xd0] sm:$0xff] }
 0x159   :  { %v1402_v51 = vpop.f32.mrf.mxu0  ;;  %v226_v30 = vunpack.c.l.bf16 %v70_v19 }
 0x15a   :  { %v1310_v59 = vpop.f32.mrf.mxu3  ;;  %v1491_v12 = vpop.f32.mrf.mxu1 }
 0x15b   :  { %v1311_v3 = vadd.f32 %v1310_v59, %v1221_v14  ;;  %v1492_v18 = vadd.f32 %v1491_v12, %v1402_v51  ;;  %v351_v14 = vadd.f32 %v287_v40, %v223_v34  ;;  %v2028_v51 = vor.u32 %v2178_v57, %v2027_v55 }
 0x15c   :  { %1263 = vmatmul.bf16.gmra.mxu2 %v2020_v61  ;;  %1441 = vmatmul.bf16.gmra.mxu0 %v388_v63  ;;  %v2177_v61 = vld [vmem:[#allocation2 + $0x1c4] sm:$0xf]  ;;  %v2029_v63 = vld [vmem:[#allocation2 + $0x1c8] sm:$0xf0] }
 0x15d   :  { %v1561_v13 = vsub.f32 %v2369_v7, %v1311_v3  ;;  %v1657_v15 = vsub.f32 %v1625_v0, %v1311_v3  ;;  %1530 = vmatmul.bf16.gmra.mxu1 %v389_v11  ;;  %v225_v7 = vunpack.c.h.bf16 %v69_v16  ;;  %v1626_v35 = vsub.f32 %v1492_v18, %v2373_v28 }
 0x15f   :  { %1593 = vst [vmem:[#allocation7 + $0x28] sm:$0xff] %v1561_v13  ;;  %1352 = vmatmul.bf16.gmra.mxu3 %v2024_v5  ;;  %v1224_v21 = vpop.f32.mrf.mxu2  ;;  %v353_v59 = vadd.f32 %v289_v44, %v225_v7  ;;  %v390_v5 = vpack.c.bf16 %v352_v52, %v350_v50  ;;  %v2032_v13 = vor.u32 %v2177_v61, %v2029_v63  ;;  %v290_v7 = vunpack.c.l.bf16 %v103_v24 }
 0x160   :  { %1690 = vst [vmem:[#allocation7 + $0x128] sm:$0xff] %v1657_v15 }
 0x161   :  { %v1404_v39 = vpop.f32.mrf.mxu0  ;;  %v391_v15 = vpack.c.bf16 %v353_v59, %v351_v14  ;;  %v2035_v14 = vld [vmem:[#allocation2 + $0x1d0] sm:$0xf]  ;;  %v2180_v59 = vld [vmem:[#allocation2 + $0x1d4] sm:$0xf0] }
 0x162   :  { %v1313_v25 = vpop.f32.mrf.mxu3  ;;  %v1493_v42 = vpop.f32.mrf.mxu1 }
 0x163   :  { %v1314_v38 = vadd.f32 %v1313_v25, %v1224_v21  ;;  %v1494_v53 = vadd.f32 %v1493_v42, %v1404_v39  ;;  %v291_v42 = vunpack.c.h.bf16 %v103_v24 }
 0x165   :  { %v1562_v45 = vsub.f32 %v2373_v28, %v1314_v38  ;;  %v1658_v47 = vsub.f32 %v1626_v35, %v1314_v38  ;;  %v1627_v11 = vsub.f32 %v1494_v53, %v2377_v49  ;;  %v292_v35 = vunpack.c.l.bf16 %v104_v32 }
 0x166   :  { %v227_v38 = vunpack.c.h.bf16 %v70_v19  ;;  %v354_v53 = vadd.f32 %v290_v7, %v226_v30 }
 0x167   :  { %1594 = vst [vmem:[#allocation7 + $0x30] sm:$0xff] %v1562_v45  ;;  %v1226_v0 = vpop.f32.mrf.mxu2  ;;  %v293_v45 = vunpack.c.h.bf16 %v104_v32  ;;  %v356_v55 = vadd.f32 %v292_v35, %v228_v33  ;;  %v105_v32 = vld [vmem:[#allocation2 + $0x1e0] sm:$0xff] }
 0x168   :  { %1691 = vst [vmem:[#allocation7 + $0x130] sm:$0xff] %v1658_v47  ;;  %v355_v61 = vadd.f32 %v291_v42, %v227_v38  ;;  %v294_v35 = vunpack.c.l.bf16 %v105_v32  ;;  %v295_v42 = vunpack.c.h.bf16 %v105_v32  ;;  %v108_v32 = vld [vmem:[#allocation2 + $0x1f8] sm:$0xff] }
 0x169   :  { %v1407_v28 = vpop.f32.mrf.mxu0 }
 0x16a   :  { %v1315_v3 = vpop.f32.mrf.mxu3  ;;  %v1496_v60 = vpop.f32.mrf.mxu1 }
 0x16b   :  { %v1316_v12 = vadd.f32 %v1315_v3, %v1226_v0  ;;  %v1497_v21 = vadd.f32 %v1496_v60, %v1407_v28  ;;  %v2179_v0 = vld [vmem:[#allocation2 + $0x1d4] sm:$0xf]  ;;  %v2037_v3 = vld [vmem:[#allocation2 + $0x1d8] sm:$0xf0] }
 0x16c   :  { %1268 = vmatmul.bf16.gmra.mxu2 %v2028_v51  ;;  %1446 = vmatmul.bf16.gmra.mxu0 %v390_v5 }
 0x16d   :  { %v1563_v16 = vsub.f32 %v2377_v49, %v1316_v12  ;;  %v1659_v18 = vsub.f32 %v1627_v11, %v1316_v12  ;;  %1535 = vmatmul.bf16.gmra.mxu1 %v391_v15  ;;  %v229_v49 = vunpack.c.h.bf16 %v71_v20  ;;  %v1628_v39 = vsub.f32 %v1497_v21, %v2381_v8  ;;  %v72_v20 = vld [vmem:[#allocation2 + $0xe0] sm:$0xff]  ;;  %v73_v21 = vld [vmem:[#allocation2 + $0xe8] sm:$0xff] }
 0x16e   :  { %v2036_v11 = vor.u32 %v2180_v59, %v2035_v14  ;;  %v392_v12 = vpack.c.bf16 %v356_v55, %v354_v53  ;;  %v2040_v15 = vor.u32 %v2179_v0, %v2037_v3  ;;  %v230_v33 = vunpack.c.l.bf16 %v72_v20  ;;  %v2043_v14 = vld [vmem:[#allocation2 + $0x1e0] sm:$0xf]  ;;  %v2182_v59 = vld [vmem:[#allocation2 + $0x1e4] sm:$0xf0]  ;;  %v2181_v0 = vld [vmem:[#allocation2 + $0x1e4] sm:$0xf] }
 0x16f   :  { %1595 = vst [vmem:[#allocation7 + $0x38] sm:$0xff] %v1563_v16  ;;  %1357 = vmatmul.bf16.gmra.mxu3 %v2032_v13  ;;  %v1229_v25 = vpop.f32.mrf.mxu2  ;;  %v357_v63 = vadd.f32 %v293_v45, %v229_v49  ;;  %v231_v49 = vunpack.c.h.bf16 %v72_v20  ;;  %v2045_v3 = vld [vmem:[#allocation2 + $0x1e8] sm:$0xf0]  ;;  %v75_v20 = vld [vmem:[#allocation2 + $0xf8] sm:$0xff] }
 0x170   :  { %1692 = vst [vmem:[#allocation7 + $0x138] sm:$0xff] %v1659_v18  ;;  %v358_v53 = vadd.f32 %v294_v35, %v230_v33  ;;  %v236_v33 = vunpack.c.l.bf16 %v75_v20  ;;  %v300_v35 = vunpack.c.l.bf16 %v108_v32 }
 0x171   :  { %v1409_v44 = vpop.f32.mrf.mxu0  ;;  %v393_v60 = vpack.c.bf16 %v357_v63, %v355_v61  ;;  %v359_v61 = vadd.f32 %v295_v42, %v231_v49 }
 0x172   :  { %v1318_v34 = vpop.f32.mrf.mxu3  ;;  %v1498_v47 = vpop.f32.mrf.mxu1 }
 0x173   :  { %v1319_v40 = vadd.f32 %v1318_v34, %v1229_v25  ;;  %v1499_v57 = vadd.f32 %v1498_v47, %v1409_v44  ;;  %v106_v25 = vld [vmem:[#allocation2 + $0x1e8] sm:$0xff]  ;;  %v232_v34 = vunpack.c.l.bf16 %v73_v21 }
 0x174   :  { %v296_v38 = vunpack.c.l.bf16 %v106_v25  ;;  %v297_v45 = vunpack.c.h.bf16 %v106_v25 }
 0x175   :  { %v1564_v50 = vsub.f32 %v2381_v8, %v1319_v40  ;;  %v1660_v52 = vsub.f32 %v1628_v39, %v1319_v40  ;;  %v1629_v28 = vsub.f32 %v1499_v57, %v2385_v31 }
 0x176   :  { %v360_v55 = vadd.f32 %v296_v38, %v232_v34 }
 0x177   :  { %1596 = vst [vmem:[#allocation7 + $0x40] sm:$0xff] %v1564_v50  ;;  %v1231_v51 = vpop.f32.mrf.mxu2 }
 0x178   :  { %1693 = vst [vmem:[#allocation7 + $0x140] sm:$0xff] %v1660_v52 }
 0x179   :  { %v1412_v8 = vpop.f32.mrf.mxu0 }
 0x17a   :  { %v1320_v5 = vpop.f32.mrf.mxu3  ;;  %v1501_v16 = vpop.f32.mrf.mxu1 }
 0x17b   :  { %v1321_v13 = vadd.f32 %v1320_v5, %v1231_v51  ;;  %v1502_v24 = vadd.f32 %v1501_v16, %v1412_v8  ;;  %v2048_v8 = vor.u32 %v2181_v0, %v2045_v3 }
 0x17c   :  { %1273 = vmatmul.bf16.gmra.mxu2 %v2036_v11  ;;  %1451 = vmatmul.bf16.gmra.mxu0 %v392_v12  ;;  %v2044_v11 = vor.u32 %v2182_v59, %v2043_v14  ;;  %v394_v12 = vpack.c.bf16 %v360_v55, %v358_v53  ;;  %v2051_v55 = vld [vmem:[#allocation2 + $0x1f0] sm:$0xf] }
 0x17d   :  { %v1565_v18 = vsub.f32 %v2385_v31, %v1321_v13  ;;  %v1661_v19 = vsub.f32 %v1629_v28, %v1321_v13  ;;  %1540 = vmatmul.bf16.gmra.mxu1 %v393_v60  ;;  %v233_v31 = vunpack.c.h.bf16 %v73_v21  ;;  %v1630_v39 = vsub.f32 %v1502_v24, %v2389_v56  ;;  %v107_v24 = vld [vmem:[#allocation2 + $0x1f0] sm:$0xff] }
 0x17f   :  { %1597 = vst [vmem:[#allocation7 + $0x48] sm:$0xff] %v1565_v18  ;;  %1362 = vmatmul.bf16.gmra.mxu3 %v2040_v15  ;;  %v1234_v30 = vpop.f32.mrf.mxu2  ;;  %v361_v63 = vadd.f32 %v297_v45, %v233_v31 }
 0x180   :  { %1694 = vst [vmem:[#allocation7 + $0x148] sm:$0xff] %v1661_v19  ;;  %v74_v19 = vld [vmem:[#allocation2 + $0xf0] sm:$0xff] }
 0x181   :  { %v1414_v44 = vpop.f32.mrf.mxu0  ;;  %v395_v15 = vpack.c.bf16 %v361_v63, %v359_v61  ;;  %v235_v38 = vunpack.c.h.bf16 %v74_v19  ;;  %v2183_v61 = vld [vmem:[#allocation2 + $0x1f4] sm:$0xf]  ;;  %v2053_v63 = vld [vmem:[#allocation2 + $0x1f8] sm:$0xf0] }
 0x182   :  { %v1323_v7 = vpop.f32.mrf.mxu3  ;;  %v1503_v47 = vpop.f32.mrf.mxu1 }
 0x183   :  { %v1324_v40 = vadd.f32 %v1323_v7, %v1234_v30  ;;  %v1504_v57 = vadd.f32 %v1503_v47, %v1414_v44  ;;  %v234_v30 = vunpack.c.l.bf16 %v74_v19  ;;  %v298_v7 = vunpack.c.l.bf16 %v107_v24 }
 0x184   :  { %v301_v44 = vunpack.c.h.bf16 %v108_v32 }
 0x185   :  { %v1566_v50 = vsub.f32 %v2389_v56, %v1324_v40  ;;  %v1662_v52 = vsub.f32 %v1630_v39, %v1324_v40  ;;  %v1631_v28 = vsub.f32 %v1504_v57, %v2393_v17  ;;  %v299_v40 = vunpack.c.h.bf16 %v107_v24  ;;  %v2184_v57 = vld [vmem:[#allocation2 + $0x1f4] sm:$0xf0] }
 0x187   :  { %1598 = vst [vmem:[#allocation7 + $0x50] sm:$0xff] %v1566_v50  ;;  %v1236_v51 = vpop.f32.mrf.mxu2  ;;  %v362_v50 = vadd.f32 %v298_v7, %v234_v30  ;;  %v363_v14 = vadd.f32 %v299_v40, %v235_v38 }
 0x188   :  { %1695 = vst [vmem:[#allocation7 + $0x150] sm:$0xff] %v1662_v52  ;;  %v364_v52 = vadd.f32 %v300_v35, %v236_v33 }
 0x189   :  { %v1417_v56 = vpop.f32.mrf.mxu0 }
 0x18a   :  { %v1325_v5 = vpop.f32.mrf.mxu3  ;;  %v1506_v60 = vpop.f32.mrf.mxu1 }
 0x18b   :  { %v1326_v13 = vadd.f32 %v1325_v5, %v1236_v51  ;;  %v1507_v21 = vadd.f32 %v1506_v60, %v1417_v56  ;;  %v2052_v51 = vor.u32 %v2184_v57, %v2051_v55  ;;  %v396_v5 = vpack.c.bf16 %v364_v52, %v362_v50 }
 0x18c   :  { %1278 = vmatmul.bf16.gmra.mxu2 %v2044_v11  ;;  %1456 = vmatmul.bf16.gmra.mxu0 %v394_v12 }
 0x18d   :  { %v1567_v16 = vsub.f32 %v2393_v17, %v1326_v13  ;;  %v1663_v18 = vsub.f32 %v1631_v28, %v1326_v13  ;;  %1545 = vmatmul.bf16.gmra.mxu1 %v395_v15  ;;  %v237_v17 = vunpack.c.h.bf16 %v75_v20  ;;  %v1632_v49 = vsub.f32 %v1507_v21, %v2397_v43 }
 0x18e   :  { %v2056_v28 = vor.u32 %v2183_v61, %v2053_v63 }
 0x18f   :  { %1599 = vst [vmem:[#allocation7 + $0x58] sm:$0xff] %v1567_v16  ;;  %1367 = vmatmul.bf16.gmra.mxu3 %v2048_v8  ;;  %v1239_v25 = vpop.f32.mrf.mxu2  ;;  %v365_v59 = vadd.f32 %v301_v44, %v237_v17 }
 0x190   :  { %1696 = vst [vmem:[#allocation7 + $0x158] sm:$0xff] %v1663_v18 }
 0x191   :  { %v1419_v39 = vpop.f32.mrf.mxu0  ;;  %v397_v13 = vpack.c.bf16 %v365_v59, %v363_v14 }
 0x192   :  { %v1328_v34 = vpop.f32.mrf.mxu3  ;;  %v1508_v42 = vpop.f32.mrf.mxu1 }
 0x193   :  { %v1329_v31 = vadd.f32 %v1328_v34, %v1239_v25  ;;  %v1509_v53 = vadd.f32 %v1508_v42, %v1419_v39 }
 0x195   :  { %v1568_v45 = vsub.f32 %v2397_v43, %v1329_v31  ;;  %v1664_v47 = vsub.f32 %v1632_v49, %v1329_v31  ;;  %v1633_v11 = vsub.f32 %v1509_v53, %v2401_v6 }
 0x197   :  { %1600 = vst [vmem:[#allocation7 + $0x60] sm:$0xff] %v1568_v45  ;;  %v1241_v0 = vpop.f32.mrf.mxu2 }
 0x198   :  { %1697 = vst [vmem:[#allocation7 + $0x160] sm:$0xff] %v1664_v47 }
 0x199   :  { %v1422_v43 = vpop.f32.mrf.mxu0 }
 0x19a   :  { %v1330_v3 = vpop.f32.mrf.mxu3  ;;  %v1511_v56 = vpop.f32.mrf.mxu1 }
 0x19b   :  { %v1331_v12 = vadd.f32 %v1330_v3, %v1241_v0  ;;  %v1512_v60 = vadd.f32 %v1511_v56, %v1422_v43 }
 0x19c   :  { %1283 = vmatmul.bf16.gmra.mxu2 %v2052_v51  ;;  %1461 = vmatmul.bf16.gmra.mxu0 %v396_v5 }
 0x19d   :  { %v1569_v8 = vsub.f32 %v2401_v6, %v1331_v12  ;;  %v1665_v15 = vsub.f32 %v1633_v11, %v1331_v12  ;;  %1550 = vmatmul.bf16.gmra.mxu1 %v397_v13  ;;  %v1634_v19 = vsub.f32 %v1512_v60, %v2405_v37 }
 0x19f   :  { %1601 = vst [vmem:[#allocation7 + $0x68] sm:$0xff] %v1569_v8  ;;  %1372 = vmatmul.bf16.gmra.mxu3 %v2056_v28  ;;  %v1244_v16 = vpop.f32.mrf.mxu2 }
 0x1a0   :  { %1698 = vst [vmem:[#allocation7 + $0x168] sm:$0xff] %v1665_v15 }
 0x1a1   :  { %v1424_v21 = vpop.f32.mrf.mxu0 }
 0x1a2   :  { %v1333_v18 = vpop.f32.mrf.mxu3  ;;  %v1513_v24 = vpop.f32.mrf.mxu1 }
 0x1a3   :  { %v1334_v20 = vadd.f32 %v1333_v18, %v1244_v16  ;;  %v1514_v6 = vadd.f32 %v1513_v24, %v1424_v21 }
 0x1a5   :  { %v1570_v32 = vsub.f32 %v2405_v37, %v1334_v20  ;;  %v1666_v25 = vsub.f32 %v1634_v19, %v1334_v20  ;;  %v1635_v34 = vsub.f32 %v1514_v6, %v2409_v4 }
 0x1a7   :  { %1602 = vst [vmem:[#allocation7 + $0x70] sm:$0xff] %v1570_v32  ;;  %v1246_v30 = vpop.f32.mrf.mxu2 }
 0x1a8   :  { %1699 = vst [vmem:[#allocation7 + $0x170] sm:$0xff] %v1666_v25 }
 0x1a9   :  { %v1427_v35 = vpop.f32.mrf.mxu0 }
 0x1aa   :  { %v1335_v33 = vpop.f32.mrf.mxu3  ;;  %v1516_v38 = vpop.f32.mrf.mxu1 }
 0x1ab   :  { %v1336_v7 = vadd.f32 %v1335_v33, %v1246_v30  ;;  %v1517_v31 = vadd.f32 %v1516_v38, %v1427_v35 }
 0x1ad   :  { %v1571_v17 = vsub.f32 %v2409_v4, %v1336_v7  ;;  %v1667_v49 = vsub.f32 %v1635_v34, %v1336_v7  ;;  %v1636_v37 = vsub.f32 %v1517_v31, %v2351_v54 }
 0x1af   :  { %1603 = vst [vmem:[#allocation7 + $0x78] sm:$0xff] %v1571_v17  ;;  %v1249_v39 = vpop.f32.mrf.mxu2 }
 0x1b0   :  { %1700 = vst [vmem:[#allocation7 + $0x178] sm:$0xff] %v1667_v49 }
 0x1b1   :  { %v1429_v42 = vpop.f32.mrf.mxu0 }
 0x1b2   :  { %v1338_v40 = vpop.f32.mrf.mxu3  ;;  %v1518_v45 = vpop.f32.mrf.mxu1 }
 0x1b3   :  { %v1339_v44 = vadd.f32 %v1338_v40, %v1249_v39  ;;  %v1519_v52 = vadd.f32 %v1518_v45, %v1429_v42 }
 0x1b5   :  { %v1572_v47 = vsub.f32 %v2351_v54, %v1339_v44  ;;  %v1668_v50 = vsub.f32 %v1636_v37, %v1339_v44  ;;  %v1637_v4 = vsub.f32 %v1519_v52, %v2355_v9 }
 0x1b7   :  { %1604 = vst [vmem:[#allocation7 + $0x80] sm:$0xff] %v1572_v47  ;;  %v1251_v53 = vpop.f32.mrf.mxu2 }
 0x1b8   :  { %1701 = vst [vmem:[#allocation7 + $0x180] sm:$0xff] %v1668_v50 }
 0x1b9   :  { %v1432_v14 = vpop.f32.mrf.mxu0 }
 0x1ba   :  { %v1340_v55 = vpop.f32.mrf.mxu3  ;;  %v1521_v59 = vpop.f32.mrf.mxu1 }
 0x1bb   :  { %v1341_v57 = vadd.f32 %v1340_v55, %v1251_v53  ;;  %v1522_v0 = vadd.f32 %v1521_v59, %v1432_v14 }
 0x1bd   :  { %v1573_v61 = vsub.f32 %v2355_v9, %v1341_v57  ;;  %v1669_v63 = vsub.f32 %v1637_v4, %v1341_v57  ;;  %v1638_v54 = vsub.f32 %v1522_v0, %v2359_v26 }
 0x1bf   :  { %1605 = vst [vmem:[#allocation7 + $0x88] sm:$0xff] %v1573_v61  ;;  %v1254_v3 = vpop.f32.mrf.mxu2 }
 0x1c0   :  { %1702 = vst [vmem:[#allocation7 + $0x188] sm:$0xff] %v1669_v63 }
 0x1c1   :  { %v1434_v11 = vpop.f32.mrf.mxu0 }
 0x1c2   :  { %v1343_v51 = vpop.f32.mrf.mxu3  ;;  %v1523_v12 = vpop.f32.mrf.mxu1 }
 0x1c3   :  { %v1344_v5 = vadd.f32 %v1343_v51, %v1254_v3  ;;  %v1524_v13 = vadd.f32 %v1523_v12, %v1434_v11 }
 0x1c5   :  { %v1574_v43 = vsub.f32 %v2359_v26, %v1344_v5  ;;  %v1670_v28 = vsub.f32 %v1638_v54, %v1344_v5  ;;  %v1639_v9 = vsub.f32 %v1524_v13, %v2363_v46 }
 0x1c7   :  { %1606 = vst [vmem:[#allocation7 + $0x90] sm:$0xff] %v1574_v43  ;;  %v1256_v56 = vpop.f32.mrf.mxu2 }
 0x1c8   :  { %1703 = vst [vmem:[#allocation7 + $0x190] sm:$0xff] %v1670_v28 }
 0x1c9   :  { %v1437_v60 = vpop.f32.mrf.mxu0 }
 0x1ca   :  { %v1345_v8 = vpop.f32.mrf.mxu3  ;;  %v1526_v16 = vpop.f32.mrf.mxu1 }
 0x1cb   :  { %v1346_v15 = vadd.f32 %v1345_v8, %v1256_v56  ;;  %v1527_v20 = vadd.f32 %v1526_v16, %v1437_v60 }
 0x1cd   :  { %v1575_v18 = vsub.f32 %v2363_v46, %v1346_v15  ;;  %v1671_v19 = vsub.f32 %v1639_v9, %v1346_v15  ;;  %v1640_v26 = vsub.f32 %v1527_v20, %v2367_v1 }
 0x1cf   :  { %1607 = vst [vmem:[#allocation7 + $0x98] sm:$0xff] %v1575_v18  ;;  %v1259_v21 = vpop.f32.mrf.mxu2 }
 0x1d0   :  { %1704 = vst [vmem:[#allocation7 + $0x198] sm:$0xff] %v1671_v19 }
 0x1d1   :  { %v1439_v25 = vpop.f32.mrf.mxu0 }
 0x1d2   :  { %v1348_v24 = vpop.f32.mrf.mxu3  ;;  %v1528_v6 = vpop.f32.mrf.mxu1 }
 0x1d3   :  { %v1349_v32 = vadd.f32 %v1348_v24, %v1259_v21  ;;  %v1529_v34 = vadd.f32 %v1528_v6, %v1439_v25 }
 0x1d5   :  { %v1576_v30 = vsub.f32 %v2367_v1, %v1349_v32  ;;  %v1672_v33 = vsub.f32 %v1640_v26, %v1349_v32  ;;  %v1641_v46 = vsub.f32 %v1529_v34, %v2371_v22 }
 0x1d7   :  { %1608 = vst [vmem:[#allocation7 + $0xa0] sm:$0xff] %v1576_v30  ;;  %v1261_v7 = vpop.f32.mrf.mxu2 }
 0x1d8   :  { %1705 = vst [vmem:[#allocation7 + $0x1a0] sm:$0xff] %v1672_v33 }
 0x1d9   :  { %v1442_v17 = vpop.f32.mrf.mxu0 }
 0x1da   :  { %v1350_v35 = vpop.f32.mrf.mxu3  ;;  %v1531_v49 = vpop.f32.mrf.mxu1 }
 0x1db   :  { %v1351_v38 = vadd.f32 %v1350_v35, %v1261_v7  ;;  %v1532_v40 = vadd.f32 %v1531_v49, %v1442_v17 }
 0x1dd   :  { %v1577_v31 = vsub.f32 %v2371_v22, %v1351_v38  ;;  %v1673_v39 = vsub.f32 %v1641_v46, %v1351_v38  ;;  %v1642_v1 = vsub.f32 %v1532_v40, %v2375_v41 }
 0x1df   :  { %1609 = vst [vmem:[#allocation7 + $0xa8] sm:$0xff] %v1577_v31  ;;  %v1264_v37 = vpop.f32.mrf.mxu2 }
 0x1e0   :  { %1706 = vst [vmem:[#allocation7 + $0x1a8] sm:$0xff] %v1673_v39 }
 0x1e1   :  { %v1444_v45 = vpop.f32.mrf.mxu0 }
 0x1e2   :  { %v1353_v44 = vpop.f32.mrf.mxu3  ;;  %v1533_v47 = vpop.f32.mrf.mxu1 }
 0x1e3   :  { %v1354_v42 = vadd.f32 %v1353_v44, %v1264_v37  ;;  %v1534_v53 = vadd.f32 %v1533_v47, %v1444_v45 }
 0x1e5   :  { %v1578_v50 = vsub.f32 %v2375_v41, %v1354_v42  ;;  %v1674_v52 = vsub.f32 %v1642_v1, %v1354_v42  ;;  %v1643_v22 = vsub.f32 %v1534_v53, %v2379_v2 }
 0x1e7   :  { %1610 = vst [vmem:[#allocation7 + $0xb0] sm:$0xff] %v1578_v50  ;;  %v1266_v55 = vpop.f32.mrf.mxu2 }
 0x1e8   :  { %1707 = vst [vmem:[#allocation7 + $0x1b0] sm:$0xff] %v1674_v52 }
 0x1e9   :  { %v1447_v14 = vpop.f32.mrf.mxu0 }
 0x1ea   :  { %v1355_v4 = vpop.f32.mrf.mxu3  ;;  %v1536_v59 = vpop.f32.mrf.mxu1 }
 0x1eb   :  { %v1356_v57 = vadd.f32 %v1355_v4, %v1266_v55  ;;  %v1537_v0 = vadd.f32 %v1536_v59, %v1447_v14 }
 0x1ed   :  { %v1579_v61 = vsub.f32 %v2379_v2, %v1356_v57  ;;  %v1675_v63 = vsub.f32 %v1643_v22, %v1356_v57  ;;  %v1644_v41 = vsub.f32 %v1537_v0, %v2383_v23 }
 0x1ef   :  { %1611 = vst [vmem:[#allocation7 + $0xb8] sm:$0xff] %v1579_v61  ;;  %v1269_v3 = vpop.f32.mrf.mxu2 }
 0x1f0   :  { %1708 = vst [vmem:[#allocation7 + $0x1b8] sm:$0xff] %v1675_v63 }
 0x1f1   :  { %v1449_v5 = vpop.f32.mrf.mxu0 }
 0x1f2   :  { %v1358_v51 = vpop.f32.mrf.mxu3  ;;  %v1538_v11 = vpop.f32.mrf.mxu1 }
 0x1f3   :  { %v1359_v54 = vadd.f32 %v1358_v51, %v1269_v3  ;;  %v1539_v28 = vadd.f32 %v1538_v11, %v1449_v5 }
 0x1f5   :  { %v1580_v12 = vsub.f32 %v2383_v23, %v1359_v54  ;;  %v1676_v43 = vsub.f32 %v1644_v41, %v1359_v54  ;;  %v1645_v2 = vsub.f32 %v1539_v28, %v2387_v48 }
 0x1f7   :  { %1612 = vst [vmem:[#allocation7 + $0xc0] sm:$0xff] %v1580_v12  ;;  %v1271_v13 = vpop.f32.mrf.mxu2 }
 0x1f8   :  { %1709 = vst [vmem:[#allocation7 + $0x1c0] sm:$0xff] %v1676_v43 }
 0x1f9   :  { %v1452_v9 = vpop.f32.mrf.mxu0 }
 0x1fa   :  { %v1360_v56 = vpop.f32.mrf.mxu3  ;;  %v1541_v15 = vpop.f32.mrf.mxu1 }
 0x1fb   :  { %v1361_v8 = vadd.f32 %v1360_v56, %v1271_v13  ;;  %v1542_v18 = vadd.f32 %v1541_v15, %v1452_v9 }
 0x1fd   :  { %v1581_v60 = vsub.f32 %v2387_v48, %v1361_v8  ;;  %v1677_v16 = vsub.f32 %v1645_v2, %v1361_v8  ;;  %v1646_v23 = vsub.f32 %v1542_v18, %v2391_v10 }
 0x1ff   :  { %1613 = vst [vmem:[#allocation7 + $0xc8] sm:$0xff] %v1581_v60  ;;  %v1274_v19 = vpop.f32.mrf.mxu2 }
 0x200   :  { %1710 = vst [vmem:[#allocation7 + $0x1c8] sm:$0xff] %v1677_v16 }
 0x201   :  { %v1454_v24 = vpop.f32.mrf.mxu0 }
 0x202   :  { %v1363_v20 = vpop.f32.mrf.mxu3  ;;  %v1543_v26 = vpop.f32.mrf.mxu1 }
 0x203   :  { %v1364_v21 = vadd.f32 %v1363_v20, %v1274_v19  ;;  %v1544_v6 = vadd.f32 %v1543_v26, %v1454_v24 }
 0x205   :  { %v1582_v32 = vsub.f32 %v2391_v10, %v1364_v21  ;;  %v1678_v25 = vsub.f32 %v1646_v23, %v1364_v21  ;;  %v1647_v48 = vsub.f32 %v1544_v6, %v2395_v36 }
 0x207   :  { %1614 = vst [vmem:[#allocation7 + $0xd0] sm:$0xff] %v1582_v32  ;;  %v1276_v30 = vpop.f32.mrf.mxu2 }
 0x208   :  { %1711 = vst [vmem:[#allocation7 + $0x1d0] sm:$0xff] %v1678_v25 }
 0x209   :  { %v1457_v7 = vpop.f32.mrf.mxu0 }
 0x20a   :  { %v1365_v33 = vpop.f32.mrf.mxu3  ;;  %v1546_v35 = vpop.f32.mrf.mxu1 }
 0x20b   :  { %v1366_v34 = vadd.f32 %v1365_v33, %v1276_v30  ;;  %v1547_v17 = vadd.f32 %v1546_v35, %v1457_v7 }
 0x20d   :  { %v1583_v46 = vsub.f32 %v2395_v36, %v1366_v34  ;;  %v1679_v38 = vsub.f32 %v1647_v48, %v1366_v34  ;;  %v1648_v10 = vsub.f32 %v1547_v17, %v2399_v62 }
 0x20f   :  { %1615 = vst [vmem:[#allocation7 + $0xd8] sm:$0xff] %v1583_v46  ;;  %v1279_v49 = vpop.f32.mrf.mxu2 }
 0x210   :  { %1712 = vst [vmem:[#allocation7 + $0x1d8] sm:$0xff] %v1679_v38 }
 0x211   :  { %v1459_v40 = vpop.f32.mrf.mxu0 }
 0x212   :  { %v1368_v31 = vpop.f32.mrf.mxu3  ;;  %v1548_v37 = vpop.f32.mrf.mxu1 }
 0x213   :  { %v1369_v39 = vadd.f32 %v1368_v31, %v1279_v49  ;;  %v1549_v42 = vadd.f32 %v1548_v37, %v1459_v40 }
 0x215   :  { %v1584_v44 = vsub.f32 %v2399_v62, %v1369_v39  ;;  %v1680_v1 = vsub.f32 %v1648_v10, %v1369_v39  ;;  %v1649_v36 = vsub.f32 %v1549_v42, %v2403_v29 }
 0x217   :  { %1616 = vst [vmem:[#allocation7 + $0xe0] sm:$0xff] %v1584_v44  ;;  %v1281_v45 = vpop.f32.mrf.mxu2 }
 0x218   :  { %1713 = vst [vmem:[#allocation7 + $0x1e0] sm:$0xff] %v1680_v1 }
 0x219   :  { %v1462_v52 = vpop.f32.mrf.mxu0 }
 0x21a   :  { %v1370_v47 = vpop.f32.mrf.mxu3  ;;  %v1551_v53 = vpop.f32.mrf.mxu1 }
 0x21b   :  { %v1371_v50 = vadd.f32 %v1370_v47, %v1281_v45  ;;  %v1552_v22 = vadd.f32 %v1551_v53, %v1462_v52 }
 0x21d   :  { %v1585_v55 = vsub.f32 %v2403_v29, %v1371_v50  ;;  %v1681_v4 = vsub.f32 %v1649_v36, %v1371_v50  ;;  %v1650_v62 = vsub.f32 %v1552_v22, %v2407_v58 }
 0x21f   :  { %1617 = vst [vmem:[#allocation7 + $0xe8] sm:$0xff] %v1585_v55  ;;  %v1284_v57 = vpop.f32.mrf.mxu2 }
 0x220   :  { %1714 = vst [vmem:[#allocation7 + $0x1e8] sm:$0xff] %v1681_v4 }
 0x221   :  { %v1464_v61 = vpop.f32.mrf.mxu0 }
 0x222   :  { %v1373_v14 = vpop.f32.mrf.mxu3  ;;  %v1553_v63 = vpop.f32.mrf.mxu1 }
 0x223   :  { %v1374_v59 = vadd.f32 %v1373_v14, %v1284_v57  ;;  %v1554_v51 = vadd.f32 %v1553_v63, %v1464_v61 }
 0x225   :  { %v1586_v0 = vsub.f32 %v2407_v58, %v1374_v59  ;;  %v1682_v3 = vsub.f32 %v1650_v62, %v1374_v59  ;;  %v1651_v29 = vsub.f32 %v1554_v51, %v2411_v27 }
 0x227   :  { %1618 = vst [vmem:[#allocation7 + $0xf0] sm:$0xff] %v1586_v0  ;;  %v1286_v41 = vpop.f32.mrf.mxu2 }
 0x228   :  { %1715 = vst [vmem:[#allocation7 + $0x1f0] sm:$0xff] %v1682_v3 }
 0x22a   :  { %v1375_v54 = vpop.f32.mrf.mxu3 }
 0x22b   :  { %v1376_v5 = vadd.f32 %v1375_v54, %v1286_v41 }
 0x22d   :  { %v1587_v11 = vsub.f32 %v2411_v27, %v1376_v5  ;;  %v1683_v12 = vsub.f32 %v1651_v29, %v1376_v5 }
 0x22f   :  { %1619 = vst [vmem:[#allocation7 + $0xf8] sm:$0xff] %v1587_v11 }
 0x230   :  { %1716 = vst [vmem:[#allocation7 + $0x1f8] sm:$0xff] %v1683_v12 }
 0x231   :  { %1729 = dma.vmem_to_hbm [thread:$0]  %s1722_s22, 8192, %s1724_s25, [#allocation4], %s2319_s17, %s2319_s17, %s2320_s18  }
 0x232   :  { %2316 = dma.done.wait [#allocation4], 8192  }
 0x233   :  { %2317 = vsyncadd [#allocation4], 4294959104 }
 0x234   :  { %1734 = vsyncpa [#allocation3], 1 }
 0x235   :  { %1735 = vsyncpa [#allocation6], 1 }
 0x236   :  { %1736 = vsyncpa [#allocation4], 1 }

</bundles_post_ra>
